<compile_context>
chip_gen: v7x
topology: tpu7x:2x2x1
jax: 0.10.0
libtpu: 0.0.40
codegen_flags: <defaults>
</compile_context>

<pallas_src>
import jax
import jax.numpy as jnp
from jax import lax
from jax.experimental import pallas as pl
from jax.experimental.pallas import tpu as pltpu


def _cbam_kernel(x_ref, w1t_ref, b1_ref, w2t_ref, b2_ref, m_ref, bsp_ref,
                 o_ref):
    """One (TB, C, HW) batch block per grid step.

    x_ref   : (TB, C, HW)     input slab (channels on sublanes, spatial lanes)
    w1t_ref : (C, hidden)     first 1x1-conv weight, pre-transposed
    b1_ref  : (1, hidden)     first bias (broadcast over rows)
    w2t_ref : (hidden, C)     second 1x1-conv weight, pre-transposed
    b2_ref  : (1, C)          second bias
    m_ref   : (2*HW, HW)      7x7 spatial conv as a stacked Toeplitz matrix
                              (rows [0,HW): avg map, rows [HW,2HW): max map),
                              bf16 or f32
    bsp_ref : (1,)            spatial-conv bias (SMEM scalar)
    o_ref   : (TB, C, HW)     output slab
    """
    f32 = jnp.float32
    x = x_ref[...]                                      # (TB, C, HW) f32

    # ---------------- Channel attention ----------------
    avg_c = jnp.mean(x, axis=2)                         # (TB, C)
    max_c = jnp.max(x, axis=2)                          # (TB, C)

    def mlp(p):                                         # (TB, C) -> (TB, C)
        h = jnp.dot(p, w1t_ref[...], preferred_element_type=f32) + b1_ref[...]
        h = jnp.maximum(h, 0.0)                         # (TB, hidden)
        return jnp.dot(h, w2t_ref[...], preferred_element_type=f32) + b2_ref[...]

    ca = jax.nn.sigmoid(mlp(avg_c) + mlp(max_c))        # (TB, C)
    x_ca = x * ca[:, :, None]                           # (TB, C, HW)

    # ---------------- Spatial attention ----------------
    avg_sp = jnp.mean(x_ca, axis=1)                     # (TB, HW)
    max_sp = jnp.max(x_ca, axis=1)                      # (TB, HW)
    # Stack both maps along K and run ONE lane-dense MXU matmul
    # (TB, 2*HW) @ (2*HW, HW) — the two Toeplitz products fused.
    maps = jnp.concatenate([avg_sp, max_sp], axis=1)    # (TB, 2*HW)
    conv = jnp.dot(maps.astype(m_ref.dtype), m_ref[...],
                   preferred_element_type=f32) + bsp_ref[0]   # (TB, HW) f32
    attn = jax.nn.sigmoid(conv)                         # (TB, HW)

    o_ref[...] = (x_ca * attn[:, None, :]).astype(o_ref.dtype)


def _build_conv_matrix(wconv, H, W):
    """Expand the (1, 2, K, K) 7x7 conv weights into a single stacked
    (2*H*W, H*W) Toeplitz matrix so the spatial conv over both maps becomes
    one matmul:

        conv[b, h*W + w] = sum_{c, h', w'} map_c[b, h'*W + w']
                                           * M[c*H*W + h'*W + w', h*W + w]

    Pure weight preprocessing (independent of activations); call once.
    O((H*W)^2) weight memory — fine for small feature maps, use a roll-based
    49-tap formulation for large spatial sizes instead.
    """
    K = wconv.shape[-1]
    P = K // 2
    wk = wconv.astype(jnp.float32)[0]                        # (2, K, K)
    hh = jnp.arange(H)
    ww = jnp.arange(W)
    dh = hh[:, None, None, None] - hh[None, None, :, None] + P  # (h',w',h,w)
    dw = ww[None, :, None, None] - ww[None, None, None, :] + P
    valid = (dh >= 0) & (dh < K) & (dw >= 0) & (dw < K)
    dh_c = jnp.clip(dh, 0, K - 1)
    dw_c = jnp.clip(dw, 0, K - 1)
    m = jnp.where(valid[None], wk[:, dh_c, dw_c], 0.0)       # (2, H, W, H, W)
    return m.reshape(2 * H * W, H * W)


def prepare_cbam_params(params, H, W, conv_mat_dtype=jnp.bfloat16):
    """One-time parameter re-layout (do this at module init, NOT per call)."""
    w1, b1, w2, b2, wconv, bconv = params
    hidden, C = w1.shape
    k_w1t = w1.astype(jnp.float32).T                    # (C, hidden)
    k_b1 = b1.astype(jnp.float32).reshape(1, hidden)    # (1, hidden)
    k_w2t = w2.astype(jnp.float32).T                    # (hidden, C)
    k_b2 = b2.astype(jnp.float32).reshape(1, C)         # (1, C)
    k_m = _build_conv_matrix(wconv, H, W).astype(conv_mat_dtype)  # (2HW, HW)
    k_bsp = bconv.reshape(-1).astype(jnp.float32)       # (1,)
    return (k_w1t, k_b1, k_w2t, k_b2, k_m, k_bsp)


def _pick_batch_block(B, C, HW, itemsize=4, max_block_bytes=2 << 20):
    """Largest divisor of B whose x-slab fits the byte budget, preferring to
    keep >= 2 grid steps so both v7x TensorCores get work."""
    per_elem = max(1, C * HW * itemsize)
    cap = max(1, min(B, max_block_bytes // per_elem))
    divisors = [tb for tb in range(1, cap + 1) if B % tb == 0]
    two_step = [tb for tb in divisors if B // tb >= 2]
    return max(two_step) if two_step else max(divisors)


def cbam_pallas(x_nchw, kparams, batch_block=None):
    """CBAM forward.  Input/output are NCHW float32 (PyTorch convention).
    `kparams` comes from prepare_cbam_params (cached across calls)."""
    w1t, b1, w2t, b2, m, bsp = kparams
    B, C, H, W = x_nchw.shape
    HW = H * W
    hidden = w1t.shape[1]
    assert m.shape == (2 * HW, HW)

    tb = batch_block if batch_block is not None else _pick_batch_block(B, C, HW)
    assert B % tb == 0, (B, tb)

    # Free reshape only (NCHW is already (B, C, H*W)-contiguous).
    # TODO(synk): if the surrounding model runs bf16 activations, keep the
    # kernel I/O in bf16 end-to-end to halve HBM traffic (kernel is mem-bound).
    x_flat = x_nchw.reshape(B, C, HW).astype(jnp.float32)

    out_flat = pl.pallas_call(
        _cbam_kernel,
        out_shape=jax.ShapeDtypeStruct((B, C, HW), jnp.float32),
        grid=(B // tb,),
        in_specs=[
            pl.BlockSpec((tb, C, HW), lambda b: (b, 0, 0)),
            pl.BlockSpec((C, hidden), lambda b: (0, 0)),
            pl.BlockSpec((1, hidden), lambda b: (0, 0)),
            pl.BlockSpec((hidden, C), lambda b: (0, 0)),
            pl.BlockSpec((1, C), lambda b: (0, 0)),
            pl.BlockSpec((2 * HW, HW), lambda b: (0, 0)),
            pl.BlockSpec(memory_space=pltpu.MemorySpace.SMEM),
        ],
        out_specs=pl.BlockSpec((tb, C, HW), lambda b: (b, 0, 0)),
        compiler_params=pltpu.CompilerParams(
            dimension_semantics=("parallel",)),   # batch blocks independent
    )(x_flat, w1t, b1, w2t, b2, m, bsp)

    return out_flat.reshape(B, C, H, W)


def cbam_ref(x, params):
    """Pure-JAX reference matching the PyTorch module (NCHW)."""
    w1, b1, w2, b2, wconv, bconv = params
    hp = lax.Precision.HIGHEST
    P = wconv.shape[-1] // 2

    avg = jnp.mean(x, axis=(2, 3), keepdims=True)
    mx = jnp.max(x, axis=(2, 3), keepdims=True)

    def fc(p):
        v = jnp.einsum('bcij,hc->bhij', p, w1, precision=hp) + b1.reshape(1, -1, 1, 1)
        v = jnp.maximum(v, 0.0)
        v = jnp.einsum('bhij,ch->bcij', v, w2, precision=hp) + b2.reshape(1, -1, 1, 1)
        return v

    ca = jax.nn.sigmoid(fc(avg) + fc(mx))
    x = x * ca

    avg_sp = jnp.mean(x, axis=1, keepdims=True)
    max_sp = jnp.max(x, axis=1, keepdims=True)
    attn_in = jnp.concatenate([avg_sp, max_sp], axis=1)        # (B, 2, H, W)
    conv = lax.conv_general_dilated(
        attn_in, wconv, window_strides=(1, 1), padding=((P, P), (P, P)),
        dimension_numbers=('NCHW', 'OIHW', 'NCHW'),
        precision=hp) + bconv.reshape(1, 1, 1, 1)
    attn = jax.nn.sigmoid(conv)
    return x * attn


if __name__ == "__main__":
    # ratio=16 => channels must be >= 16; B=8 exercises the batched grid
    # (TB=4 per step, 2 grid steps).
    B, C, H, W = 8, 32, 16, 16
    hidden = C // 16
    K = 7

    key = jax.random.PRNGKey(0)
    kx, k1, k2, k3, k4, k5, k6 = jax.random.split(key, 7)

    x = jax.random.normal(kx, (B, C, H, W), dtype=jnp.float32)

    # Deterministic synthetic parameters (shapes from the module's __init__).
    w1 = jax.random.normal(k1, (hidden, C), dtype=jnp.float32) * 0.1     # Conv2d(C, C//16, 1)
    b1 = jax.random.normal(k2, (hidden,), dtype=jnp.float32) * 0.1
    w2 = jax.random.normal(k3, (C, hidden), dtype=jnp.float32) * 0.1     # Conv2d(C//16, C, 1)
    b2 = jax.random.normal(k4, (C,), dtype=jnp.float32) * 0.1
    wconv = jax.random.normal(k5, (1, 2, K, K), dtype=jnp.float32) * 0.1 # Conv2d(2, 1, 7, pad=3)
    bconv = jax.random.normal(k6, (1,), dtype=jnp.float32) * 0.1

    params = (w1, b1, w2, b2, wconv, bconv)
    ref = cbam_ref(x, params)

    # f32 Toeplitz: tight tolerance (only MXU f32 accumulation-order noise).
    # bf16 Toeplitz (the perf config for v6e/v7x): looser tolerance for the
    # 8-bit-mantissa staging of the K=2*HW spatial-conv contraction; real
    # layout/indexing bugs would produce O(0.1-1) errors and still fail.
    for conv_dtype, tol in ((jnp.float32, 3e-3), (jnp.bfloat16, 3e-2)):
        kparams = prepare_cbam_params(params, H, W, conv_mat_dtype=conv_dtype)
        out = jax.block_until_ready(cbam_pallas(x, kparams))
        assert out.shape == (B, C, H, W)
        err = float(jnp.max(jnp.abs(out - ref)))
        assert jnp.allclose(out, ref, atol=tol, rtol=tol), (str(conv_dtype), err)

    print("KERNEL_OK")
</pallas_src>

<mosaic_0001>
module attributes {stable_mosaic.version = 11 : i64} {
  func.func @_cbam_kernel(%arg0: i32, %arg1: memref<4x32x256xf32, #tpu.memory_space<vmem>>, %arg2: memref<32x2xf32, #tpu.memory_space<vmem>>, %arg3: memref<1x2xf32, #tpu.memory_space<vmem>>, %arg4: memref<2x32xf32, #tpu.memory_space<vmem>>, %arg5: memref<1x32xf32, #tpu.memory_space<vmem>>, %arg6: memref<512x256xf32, #tpu.memory_space<vmem>>, %arg7: memref<1xf32, #tpu.memory_space<smem>>, %arg8: memref<4x32x256xf32, #tpu.memory_space<vmem>>) attributes {dimension_semantics = [#tpu.dimension_semantics<parallel>], iteration_bounds = array<i64: 2>, scalar_prefetch = 0 : i64, scratch_operands = 0 : i64, tpu.core_type = #tpu.core_type<tc>, window_params = [{transform_indices = @transform_0, window_bounds = array<i64: 4, 32, 256>}, {pipeline_mode = #tpu.pipeline_mode<synchronous>, transform_indices = @transform_1, window_bounds = array<i64: 32, 2>}, {pipeline_mode = #tpu.pipeline_mode<synchronous>, transform_indices = @transform_2, window_bounds = array<i64: 1, 2>}, {pipeline_mode = #tpu.pipeline_mode<synchronous>, transform_indices = @transform_3, window_bounds = array<i64: 2, 32>}, {pipeline_mode = #tpu.pipeline_mode<synchronous>, transform_indices = @transform_4, window_bounds = array<i64: 1, 32>}, {pipeline_mode = #tpu.pipeline_mode<synchronous>, transform_indices = @transform_5, window_bounds = array<i64: 512, 256>}, {transform_indices = @transform_6, window_bounds = array<i64: 1>}, {transform_indices = @transform_7, window_bounds = array<i64: 4, 32, 256>}]} {
    %c0 = arith.constant 0 : index
    %c0_0 = arith.constant 0 : index
    %c0_1 = arith.constant 0 : index
    %0 = vector.load %arg1[%c0, %c0_0, %c0_1] : memref<4x32x256xf32, #tpu.memory_space<vmem>>, vector<4x32x256xf32>
    %cst = arith.constant dense<0.000000e+00> : vector<4x32xf32>
    %1 = vector.multi_reduction <add>, %0, %cst [2] : vector<4x32x256xf32> to vector<4x32xf32>
    %cst_2 = arith.constant 2.560000e+02 : f32
    %2 = vector.broadcast %cst_2 : f32 to vector<4x32xf32>
    %3 = arith.divf %1, %2 : vector<4x32xf32>
    %cst_3 = arith.constant dense<0xFF800000> : vector<4x32xf32>
    %4 = vector.multi_reduction <maximumf>, %0, %cst_3 [2] : vector<4x32x256xf32> to vector<4x32xf32>
    %c0_4 = arith.constant 0 : index
    %c0_5 = arith.constant 0 : index
    %5 = vector.load %arg2[%c0_4, %c0_5] : memref<32x2xf32, #tpu.memory_space<vmem>>, vector<32x2xf32>
    %cst_6 = arith.constant dense<0.000000e+00> : vector<4x2xf32>
    %6 = tpu.matmul %3, %5, %cst_6 {dimension_numbers = #tpu.dot_dimension_numbers<[1], [0], [0], [1], [0, 0, 1, 1], [], []>} : vector<4x32xf32>, vector<32x2xf32>, vector<4x2xf32> -> vector<4x2xf32>
    %c0_7 = arith.constant 0 : index
    %c0_8 = arith.constant 0 : index
    %7 = vector.load %arg3[%c0_7, %c0_8] : memref<1x2xf32, #tpu.memory_space<vmem>>, vector<1x2xf32>
    %8 = vector.broadcast %7 : vector<1x2xf32> to vector<4x2xf32>
    %9 = arith.addf %6, %8 : vector<4x2xf32>
    %cst_9 = arith.constant 0.000000e+00 : f32
    %10 = vector.broadcast %cst_9 : f32 to vector<4x2xf32>
    %11 = arith.maximumf %9, %10 : vector<4x2xf32>
    %c0_10 = arith.constant 0 : index
    %c0_11 = arith.constant 0 : index
    %12 = vector.load %arg4[%c0_10, %c0_11] : memref<2x32xf32, #tpu.memory_space<vmem>>, vector<2x32xf32>
    %cst_12 = arith.constant dense<0.000000e+00> : vector<4x32xf32>
    %13 = tpu.matmul %11, %12, %cst_12 {dimension_numbers = #tpu.dot_dimension_numbers<[1], [0], [0], [1], [0, 0, 1, 1], [], []>} : vector<4x2xf32>, vector<2x32xf32>, vector<4x32xf32> -> vector<4x32xf32>
    %c0_13 = arith.constant 0 : index
    %c0_14 = arith.constant 0 : index
    %14 = vector.load %arg5[%c0_13, %c0_14] : memref<1x32xf32, #tpu.memory_space<vmem>>, vector<1x32xf32>
    %15 = vector.broadcast %14 : vector<1x32xf32> to vector<4x32xf32>
    %16 = arith.addf %13, %15 : vector<4x32xf32>
    %c0_15 = arith.constant 0 : index
    %c0_16 = arith.constant 0 : index
    %17 = vector.load %arg2[%c0_15, %c0_16] : memref<32x2xf32, #tpu.memory_space<vmem>>, vector<32x2xf32>
    %cst_17 = arith.constant dense<0.000000e+00> : vector<4x2xf32>
    %18 = tpu.matmul %4, %17, %cst_17 {dimension_numbers = #tpu.dot_dimension_numbers<[1], [0], [0], [1], [0, 0, 1, 1], [], []>} : vector<4x32xf32>, vector<32x2xf32>, vector<4x2xf32> -> vector<4x2xf32>
    %c0_18 = arith.constant 0 : index
    %c0_19 = arith.constant 0 : index
    %19 = vector.load %arg3[%c0_18, %c0_19] : memref<1x2xf32, #tpu.memory_space<vmem>>, vector<1x2xf32>
    %20 = vector.broadcast %19 : vector<1x2xf32> to vector<4x2xf32>
    %21 = arith.addf %18, %20 : vector<4x2xf32>
    %cst_20 = arith.constant 0.000000e+00 : f32
    %22 = vector.broadcast %cst_20 : f32 to vector<4x2xf32>
    %23 = arith.maximumf %21, %22 : vector<4x2xf32>
    %c0_21 = arith.constant 0 : index
    %c0_22 = arith.constant 0 : index
    %24 = vector.load %arg4[%c0_21, %c0_22] : memref<2x32xf32, #tpu.memory_space<vmem>>, vector<2x32xf32>
    %cst_23 = arith.constant dense<0.000000e+00> : vector<4x32xf32>
    %25 = tpu.matmul %23, %24, %cst_23 {dimension_numbers = #tpu.dot_dimension_numbers<[1], [0], [0], [1], [0, 0, 1, 1], [], []>} : vector<4x2xf32>, vector<2x32xf32>, vector<4x32xf32> -> vector<4x32xf32>
    %c0_24 = arith.constant 0 : index
    %c0_25 = arith.constant 0 : index
    %26 = vector.load %arg5[%c0_24, %c0_25] : memref<1x32xf32, #tpu.memory_space<vmem>>, vector<1x32xf32>
    %27 = vector.broadcast %26 : vector<1x32xf32> to vector<4x32xf32>
    %28 = arith.addf %25, %27 : vector<4x32xf32>
    %29 = arith.addf %16, %28 : vector<4x32xf32>
    %30 = arith.negf %29 : vector<4x32xf32>
    %31 = math.exp %30 : vector<4x32xf32>
    %cst_26 = arith.constant 1.000000e+00 : f32
    %32 = vector.broadcast %cst_26 : f32 to vector<4x32xf32>
    %33 = arith.addf %32, %31 : vector<4x32xf32>
    %34 = arith.divf %32, %33 : vector<4x32xf32>
    %35 = vector.shape_cast %34 : vector<4x32xf32> to vector<4x32x1xf32>
    %36 = vector.broadcast %35 : vector<4x32x1xf32> to vector<4x32x256xf32>
    %37 = arith.mulf %0, %36 : vector<4x32x256xf32>
    %cst_27 = arith.constant dense<0.000000e+00> : vector<4x256xf32>
    %38 = vector.multi_reduction <add>, %37, %cst_27 [1] : vector<4x32x256xf32> to vector<4x256xf32>
    %cst_28 = arith.constant 3.200000e+01 : f32
    %39 = vector.broadcast %cst_28 : f32 to vector<4x256xf32>
    %40 = arith.divf %38, %39 : vector<4x256xf32>
    %cst_29 = arith.constant dense<0xFF800000> : vector<4x256xf32>
    %41 = vector.multi_reduction <maximumf>, %37, %cst_29 [1] : vector<4x32x256xf32> to vector<4x256xf32>
    %42 = tpu.concatenate %40, %41 in 1 : vector<4x256xf32>, vector<4x256xf32> -> vector<4x512xf32>
    %c0_30 = arith.constant 0 : index
    %c0_31 = arith.constant 0 : index
    %43 = vector.load %arg6[%c0_30, %c0_31] : memref<512x256xf32, #tpu.memory_space<vmem>>, vector<512x256xf32>
    %cst_32 = arith.constant dense<0.000000e+00> : vector<4x256xf32>
    %44 = tpu.matmul %42, %43, %cst_32 {dimension_numbers = #tpu.dot_dimension_numbers<[1], [0], [0], [1], [0, 0, 1, 1], [], []>} : vector<4x512xf32>, vector<512x256xf32>, vector<4x256xf32> -> vector<4x256xf32>
    %c0_33 = arith.constant 0 : index
    %45 = memref.load %arg7[%c0_33] : memref<1xf32, #tpu.memory_space<smem>>
    %46 = vector.broadcast %45 : f32 to vector<4x256xf32>
    %47 = arith.addf %44, %46 : vector<4x256xf32>
    %48 = arith.negf %47 : vector<4x256xf32>
    %49 = math.exp %48 : vector<4x256xf32>
    %cst_34 = arith.constant 1.000000e+00 : f32
    %50 = vector.broadcast %cst_34 : f32 to vector<4x256xf32>
    %51 = arith.addf %50, %49 : vector<4x256xf32>
    %52 = arith.divf %50, %51 : vector<4x256xf32>
    %53 = vector.shape_cast %52 : vector<4x256xf32> to vector<4x1x256xf32>
    %54 = vector.broadcast %53 : vector<4x1x256xf32> to vector<4x32x256xf32>
    %55 = arith.mulf %37, %54 : vector<4x32x256xf32>
    %c0_35 = arith.constant 0 : index
    %c0_36 = arith.constant 0 : index
    %c0_37 = arith.constant 0 : index
    %56 = vector.load %arg8[%c0_35, %c0_36, %c0_37] : memref<4x32x256xf32, #tpu.memory_space<vmem>>, vector<4x32x256xf32>
    tpu.vector_store %arg8[%c0_35, %c0_36, %c0_37], %55 {strides = array<i32>} : memref<4x32x256xf32, #tpu.memory_space<vmem>>, vector<4x32x256xf32>,
    return
  }
  func.func @transform_0(%arg0: i32) -> (i32, i32, i32) {
    %c0_i32 = arith.constant 0 : i32
    %c0_i32_0 = arith.constant 0 : i32
    %c0_i32_1 = arith.constant 0 : i32
    return %arg0, %c0_i32, %c0_i32_0 : i32, i32, i32
  }
  func.func @transform_1(%arg0: i32) -> (i32, i32) {
    %c0_i32 = arith.constant 0 : i32
    %c0_i32_0 = arith.constant 0 : i32
    %c0_i32_1 = arith.constant 0 : i32
    return %c0_i32, %c0_i32_0 : i32, i32
  }
  func.func @transform_2(%arg0: i32) -> (i32, i32) {
    %c0_i32 = arith.constant 0 : i32
    %c0_i32_0 = arith.constant 0 : i32
    %c0_i32_1 = arith.constant 0 : i32
    return %c0_i32, %c0_i32_0 : i32, i32
  }
  func.func @transform_3(%arg0: i32) -> (i32, i32) {
    %c0_i32 = arith.constant 0 : i32
    %c0_i32_0 = arith.constant 0 : i32
    %c0_i32_1 = arith.constant 0 : i32
    return %c0_i32, %c0_i32_0 : i32, i32
  }
  func.func @transform_4(%arg0: i32) -> (i32, i32) {
    %c0_i32 = arith.constant 0 : i32
    %c0_i32_0 = arith.constant 0 : i32
    %c0_i32_1 = arith.constant 0 : i32
    return %c0_i32, %c0_i32_0 : i32, i32
  }
  func.func @transform_5(%arg0: i32) -> (i32, i32) {
    %c0_i32 = arith.constant 0 : i32
    %c0_i32_0 = arith.constant 0 : i32
    %c0_i32_1 = arith.constant 0 : i32
    return %c0_i32, %c0_i32_0 : i32, i32
  }
  func.func @transform_6(%arg0: i32) -> i32 {
    %c0_i32 = arith.constant 0 : i32
    %c0_i32_0 = arith.constant 0 : i32
    return %c0_i32 : i32
  }
  func.func @transform_7(%arg0: i32) -> (i32, i32, i32) {
    %c0_i32 = arith.constant 0 : i32
    %c0_i32_0 = arith.constant 0 : i32
    %c0_i32_1 = arith.constant 0 : i32
    return %arg0, %c0_i32, %c0_i32_0 : i32, i32, i32
  }
}

</mosaic_0001>

<bundles_post_ra>
// kernel: tpu_custom_call.1
= control target key start
LH: loop header
LB: loop body
LE: loop exit
PB: predicated region body
PF: predicated region fallthrough
CT: control target
= control target key end

     0   :  { %s3048_s0 = inlined_call_operand.hbm [shape: f32[8,32,256], index: 0, kind: input, shape index: {}]   ;;  %s3049_s1 = inlined_call_operand.vmem [shape: f32[32,2], index: 1, kind: input, shape index: {}]   ;;  %s3050_s2 = inlined_call_operand.vmem [shape: f32[1,2], index: 2, kind: input, shape index: {}]   ;;  %s3051_s3 = inlined_call_operand.vmem [shape: f32[2,32], index: 3, kind: input, shape index: {}]   ;;  %s3052_s4 = inlined_call_operand.vmem [shape: f32[1,32], index: 4, kind: input, shape index: {}]   ;;  %s3053_s5 = inlined_call_operand.hbm [shape: f32[512,256], index: 5, kind: input, shape index: {}]   ;;  %s3054_s6 = inlined_call_operand.<no memory space> [shape: f32[1], index: 6, kind: input, shape index: {}]   ;;  %s3055_s7 = inlined_call_operand.hbm [shape: f32[8,32,256], index: 7, kind: output, shape index: {}]  }
   0x1   :  { %12 = sst [smem:[#allocation2]] %s3054_s6 }
   0x2   :  { %13 = vsyncpa [#allocation4], 0 }
   0x3   :  { %15 = vsyncpa [#allocation4 + $0x1], 0 }
   0x4   :  { %16 = vsyncpa [#allocation7], 0 }
   0x5   :  { %17 = vsyncpa [#allocation5], 0 }
   0x6   :  { %19 = vsyncpa [#allocation5 + $0x1], 0  ;;  %s2311_s26 = smov 0   ;;  %s2313_s27 = smov 0  }
   0x7   :  { %s2315_s28 = smov 0   ;;  %s2317_s29 = smov 0  }
   0x8 LB: > { %s2332_s6 = sadd.s32 4294967295, %s2255_s29   ;;  %s1792_s30 = sadd.s32 4294967294, %s2255_s29   ;;  %s2255_s29 = sphi %s2317_s29, %s3109_s29   ;;  %s2251_s28 = sphi %s2315_s28, %s3108_s28   ;;  %s2247_s27 = sphi %s2313_s27, %s3107_s27   ;;  %s2243_s26 = sphi %s2311_s26, %s3106_s26  }
   0x9   : > { %p45_p0 = scmp.ne.s32.totalorder %s2247_s27, %s2243_s26  ;;  %p3056_p1 = scmp.eq.s32.totalorder %s2332_s6, 0 }
   0xa   : > { %p201_p3 = scmp.eq.s32.totalorder %s1792_s30, 1  ;;  %p1793_p5 = scmp.ge.s32.totalorder %s2255_s29, 1 }
   0xb   : > { %p2341_p4 = por %p3056_p1, %p45_p0  ;;  %p208_p7 = scmp.lt.s32.totalorder %s2255_s29, 3 }
   0xc   : > { %p2346_p6 = por %p201_p3, %p45_p0  ;;  %s2257_s11 = smov [#allocation6]  }
   0xd   : > { %s3070_s8 = scalar_select %p2341_p4, 1, 0 }
   0xe   : > { %s3071_s9 = scalar_select %p2346_p6, 1, 0 }
   0xf   : > { %p2351_p8 = pnand %p1793_p5, %p208_p7  ;;  %s232_s12 = sshll.u32 %s2257_s11, 4  ;;  %s2355_s12 = int_to_ptr.vmem [resolvable:$true] %s232_s12 }
  0x10   : > { %s2367_s14 = sadd.s32 1, %s2255_s29   ;;  %s32_s15 = sadd.s32 1, %s2251_s28 }
  0x11   : > { %s3072_s10 = scalar_select %p2351_p8, 1, 0 }
  0x12   : > { %p2026_p9 = pneg %p2351_p8  ;;  %s29_s16 = ssub.s32 %s2255_s29, %s2367_s14 }
  0x13   : > { %s2127_s19 = scalar_lea.hbm %s3053_s5, 16384 }
  0x14   : > { %p2362_p11 = pnand %p2026_p9, %p3056_p1  ;;  %p2128_p12 = scmp.ne.s32.totalorder %s3053_s5, %s2127_s19 }
  0x15   : > { %p2134_p5 = scmp.lt.u32.totalorder %s2127_s19, %s3053_s5 }
  0x16   : > { %p2129_p13 = pneg %p2362_p11 }
  0x18   : > { %p2130_p0 = pnand %p2129_p13, %p2128_p12 }
  0x1a   : > { %p2131_p3 = pneg %p2130_p0 }
  0x1c   : > { %p2136_p7 = pnand %p2134_p5, %p2131_p3 }
  0x1e   : > { %2139 = shalt.err (!%p2136_p7)
}
  0x1f   : > { %s2140_s24 = scalar_lea.vmem %s2355_s12, 16384  ;;  %p2148_p2 = scmp.lt.s32.totalorder %s2355_s12, %s2355_s12 }
  0x20   : > { %p2141_p9 = scmp.ne.s32.totalorder %s2355_s12, %s2140_s24  ;;  %p2149_p6 = scmp.lt.s32.totalorder %s2140_s24, %s2140_s24 }
  0x22   : > { %p2143_p10 = pnand %p2141_p9, %p2129_p13  ;;  %p2150_p4 = por %p2149_p6, %p2148_p2 }
  0x24   : > { %p2144_p1 = pneg %p2143_p10 }
  0x26   : > { %p2151_p8 = pnand %p2150_p4, %p2144_p1 }
  0x28   : > { %2154 = shalt.err (!%p2151_p8)
}
  0x29   : > { %s2258_s25 = smov 256   ;;  %s2259_s30 = smov 16  }
  0x2a   : > { %2029 = dma.hbm_to_vmem [thread:$0]  (!%p2362_p11), %s3053_s5, 16384, %s2355_s12, [#allocation7], %s2258_s25, %s2258_s25, %s2259_s30  }
  0x2b   : > { %p30_p1 = scmp.eq.s32.totalorder %s29_s16, 0  ;;  %p39_p2 = scmp.ne.s32.totalorder %s2251_s28, %s2247_s27 }
  0x2c   : > { %p40_p4 = scmp.eq.s32.totalorder %s2255_s29, 0  ;;  %p2039_p6 = scmp.lt.s32.totalorder %s2255_s29, 2 }
  0x2d   : > { %s2401_s18 = scalar_select %p30_p1, %s2251_s28, %s32_s15  }
  0x2e   : > { %p41_p8 = por %p40_p4, %p39_p2  ;;  %p3074_p10 = scmp.eq.s32.totalorder %s2332_s6, 1 }
  0x2f   : > { %s249_s13 = sand.u32 1, %s2251_s28   ;;  %s1822_s20 = sshll.u32 %s2255_s29, 12 }
  0x30   : > { %p2405_p12 = por %p3074_p10, %p39_p2  ;;  %s1796_s21 = sshll.u32 %s249_s13, 8 }
  0x31   : > { %s2414_s24 = scalar_lea.hbm %s3048_s0, %s1822_s20  ;;  %s253_s12 = scalar_lea.vmem [#allocation3], %s1796_s21 }
  0x32   : > { %s261_s15 = sshll.u32 %s253_s12, 4  ;;  %p2416_p11 = pnand %p2039_p6, %p41_p8  ;;  %s2420_s15 = int_to_ptr.vmem [resolvable:$true] %s261_s15 }
  0x33   : > { %s2422_s11 = scalar_lea.sflag [#allocation4], %s249_s13  ;;  %s2155_s17 = scalar_lea.hbm %s2414_s24, 4096 }
  0x34   : > { %p2156_p13 = scmp.ne.s32.totalorder %s2414_s24, %s2155_s17  ;;  %p2157_p0 = pneg %p2416_p11 }
  0x35   : > { %s2160_s22 = scalar_lea.hbm %s3048_s0, 8192  ;;  %p2161_p7 = scmp.lt.u32.totalorder %s2414_s24, %s3048_s0 }
  0x36   : > { %p2158_p3 = pnand %p2157_p0, %p2156_p13  ;;  %p2162_p9 = scmp.lt.u32.totalorder %s2160_s22, %s2155_s17 }
  0x37   : > { %p2164_p2 = scmp.lt.u32.totalorder %s2155_s17, %s2414_s24 }
  0x38   : > { %p2159_p5 = pneg %p2158_p3  ;;  %p2163_p1 = por %p2162_p9, %p2161_p7 }
  0x3a   : > { %p2165_p4 = por %p2164_p2, %p2163_p1 }
  0x3c   : > { %p2166_p6 = pnand %p2165_p4, %p2159_p5 }
  0x3e   : > { %2169 = shalt.err (!%p2166_p6)
}
  0x3f   : > { %s2170_s13 = scalar_lea.vmem %s2420_s15, 4096  ;;  %s2260_s20 = smov [#allocation3]  }
  0x40   : > { %p2171_p8 = scmp.ne.s32.totalorder %s2420_s15, %s2170_s13  ;;  %s2175_s21 = sshll.u32 %s2260_s20, 4  ;;  %s2176_s21 = int_to_ptr.vmem [resolvable:$false] %s2175_s21 }
  0x41   : > { %s2177_s23 = scalar_lea.vmem %s2176_s21, 8192  ;;  %p2178_p3 = scmp.lt.s32.totalorder %s2420_s15, %s2176_s21 }
  0x42   : > { %p2173_p10 = pnand %p2171_p8, %p2157_p0  ;;  %p2179_p7 = scmp.lt.s32.totalorder %s2177_s23, %s2170_s13 }
  0x44   : > { %p2174_p13 = pneg %p2173_p10  ;;  %p2180_p9 = por %p2179_p7, %p2178_p3 }
  0x46   : > { %p2181_p1 = pnand %p2180_p9, %p2174_p13 }
  0x48   : > { %2184 = shalt.err (!%p2181_p1)
}
  0x49   : > { %2033 = dma.hbm_to_vmem [thread:$0]  (!%p2416_p11), %s2414_s24, 4096, %s2420_s15, %s2422_s11, %s2258_s25, %s2258_s25, %s2259_s30  }
  0x4a   : > { %p3077_p0 = scmp.ne.s32.totalorder %s3072_s10, 0 }
  0x4c   : > { %273 = sbr.rel (%p3077_p0) target bundleno = 1222 (0x4c6), region = 48 }
  0x53   : > { %s2456_s17 = sand.u32 1, %s2247_s27   ;;  %p3078_p5 = scmp.ne.s32.totalorder %s3070_s8, 0 }
  0x54   : > { %s1801_s22 = sshll.u32 %s2456_s17, 8  ;;  %s276_s12 = scalar_lea.sflag [#allocation4], %s2456_s17 }
  0x55   : > { %s2462_s16 = scalar_lea.vmem [#allocation3], %s1801_s22 }
  0x56   : > { %2230 = dma.done.wait (%p3078_p5), %s276_s12, 4096  }
  0x57   : > { %2232 = vsyncadd (%p3078_p5), %s276_s12, 4294963200  ;;  %p3079_p11 = scmp.eq.s32.totalorder %s2332_s6, 0 }
  0x59   : > { %2234 = dma.done.wait (%p3079_p11), [#allocation7], 16384   ;;  %p3080_p2 = pmov %p3079_p11 }
  0x5a   : > { %v2473_v0 = vld [vmem:[%s2462_s16 + $0x40] sm:$0xff]  ;;  %v2476_v1 = vld [vmem:[%s2462_s16 + $0x48] sm:$0xff]  ;;  %v2487_v5 = vld [vmem:[%s2462_s16 + $0x50] sm:$0xff]  ;;  %v2261_v59 = vmov 0.0|0.0   ;;  %vm2262_vm0 = vmmov 0   ;;  %vm499_vm1 = vcmask 130112  }
  0x5b   : > { %2236 = vsyncadd (%p3080_p2), [#allocation7], 4294950912  ;;  %v2479_v2 = vld [vmem:[%s2462_s16] sm:$0xff]  ;;  %v360_v3 = vadd.f32 %v2476_v1, %v2473_v0  ;;  %v2484_v4 = vld [vmem:[%s2462_s16 + $0x8] sm:$0xff]  ;;  %v425_v51 = vmax.f32 %v2473_v0, %v2476_v1  ;;  %1871 = vmatprep.subr.bf16.mxu0 %v2261_v59  ;;  %1877 = vmatprep.subr.bf16.mxu1 %v2261_v59  ;;  %vm506_vm2 = vcmask 195712   ;;  %vm513_vm3 = vcmask 261312  }
  0x5c   : > { %v2490_v6 = vld [vmem:[%s2462_s16 + $0x58] sm:$0xff]  ;;  %v348_v7 = vadd.f32 %v2484_v4, %v2479_v2  ;;  %v318_v8 = vld [vmem:[%s2462_s16 + $0x10] sm:$0xff]  ;;  %v328_v12 = vld [vmem:[%s2462_s16 + $0x60] sm:$0xff]  ;;  %v413_v49 = vmax.f32 %v2479_v2, %v2484_v4  ;;  %vm572_vm4 = vcmask 1041409   ;;  %vm574_vm5 = vcmask 1042434   ;;  %s2940_s25 = scalar_lea.vmem [#allocation8], %s1801_s22 }
  0x5d   : > { %v319_v9 = vld [vmem:[%s2462_s16 + $0x18] sm:$0xff]  ;;  %361 = vadd.xlane.f32.xlu1 %v360_v3  ;;  %v363_v10 = vadd.f32 %v2490_v6, %v2487_v5  ;;  %v329_v13 = vld [vmem:[%s2462_s16 + $0x68] sm:$0xff]  ;;  %v320_v14 = vld [vmem:[%s2462_s16 + $0x20] sm:$0xff]  ;;  %v428_v50 = vmax.f32 %v2487_v5, %v2490_v6  ;;  %v2263_v3 = vmov 0.0   ;;  %vm576_vm6 = vcmask 1043459   ;;  %s1824_s22 = sshll.u32 %s2332_s6, 12 }
  0x5e   : > { %349 = vadd.xlane.f32.xlu0 %v348_v7  ;;  %v351_v11 = vadd.f32 %v319_v9, %v318_v8  ;;  %v321_v15 = vld [vmem:[%s2462_s16 + $0x28] sm:$0xff]  ;;  %v366_v16 = vadd.f32 %v329_v13, %v328_v12  ;;  %v2503_v18 = vld [vmem:[%s2462_s16 + $0x90] sm:$0xff]  ;;  %v2506_v19 = vld [vmem:[%s2462_s16 + $0x98] sm:$0xff]  ;;  %v416_v48 = vmax.f32 %v318_v8, %v319_v9  ;;  %v431_v52 = vmax.f32 %v328_v12, %v329_v13  ;;  %s1709_s30 = sshll.u32 %s2940_s25, 4  ;;  %s2988_s15 = scalar_lea.hbm %s3055_s7, %s1824_s22  ;;  %s2990_s30 = int_to_ptr.vmem [resolvable:$true] %s1709_s30 }
  0x5f   : > { %v354_v17 = vadd.f32 %v321_v15, %v320_v14  ;;  %v2509_v20 = vld [vmem:[%s2462_s16 + $0x80] sm:$0xff]  ;;  %v2512_v21 = vld [vmem:[%s2462_s16 + $0x88] sm:$0xff]  ;;  %v375_v22 = vadd.f32 %v2506_v19, %v2503_v18  ;;  %v2519_v24 = vld [vmem:[%s2462_s16 + $0x70] sm:$0xff]  ;;  %v419_v53 = vmax.f32 %v320_v14, %v321_v15  ;;  %v440_v54 = vmax.f32 %v2503_v18, %v2506_v19  ;;  %1847 = vmatprep.mubr.msk.f32.mxu0 %vm2262_vm0, %v2263_v3  ;;  %s1695_s11 = scalar_lea.sflag [#allocation5], %s2456_s17  ;;  %s2185_s13 = scalar_lea.vmem %s2990_s30, 4096 }
  0x60   : > { %v372_v23 = vadd.f32 %v2512_v21, %v2509_v20  ;;  %v2522_v25 = vld [vmem:[%s2462_s16 + $0x78] sm:$0xff]  ;;  %v2525_v26 = vld [vmem:[%s2462_s16 + $0x30] sm:$0xff]  ;;  %v2535_v30 = vld [vmem:[%s2462_s16 + $0xc0] sm:$0xff]  ;;  %v437_v57 = vmax.f32 %v2509_v20, %v2512_v21  ;;  %1863 = vmatprep.mubr.msk.f32.mxu1 %vm2262_vm0, %v2263_v3  ;;  %v488_v14 = vlaneseq  ;;  %vm578_vm7 = vcmask 261120   ;;  %p2186_p4 = scmp.ne.s32.totalorder %s2990_s30, %s2185_s13  ;;  %s2265_s20 = smov [#allocation8]  }
  0x61   : > { %364 = vadd.xlane.f32.xlu1 %v363_v10  ;;  %v2528_v27 = vld [vmem:[%s2462_s16 + $0x38] sm:$0xff]  ;;  %v369_v28 = vadd.f32 %v2522_v25, %v2519_v24  ;;  %v2538_v31 = vld [vmem:[%s2462_s16 + $0xc8] sm:$0xff]  ;;  %v2541_v32 = vld [vmem:[%s2462_s16 + $0xa0] sm:$0xff]  ;;  %v434_v60 = vmax.f32 %v2519_v24, %v2522_v25  ;;  %vm664_vm8 = vcmask 1041408   ;;  %vm660_vm9 = vcmask 15360   ;;  %s2189_s21 = sshll.u32 %s2265_s20, 4  ;;  %s2190_s21 = int_to_ptr.vmem [resolvable:$false] %s2189_s21 }
  0x62   : > { %352 = vadd.xlane.f32.xlu0 %v351_v11  ;;  %v357_v29 = vadd.f32 %v2528_v27, %v2525_v26  ;;  %v2544_v33 = vld [vmem:[%s2462_s16 + $0xa8] sm:$0xff]  ;;  %v384_v34 = vadd.f32 %v2538_v31, %v2535_v30  ;;  %v2551_v36 = vld [vmem:[%s2462_s16 + $0xb0] sm:$0xff]  ;;  %v2554_v37 = vld [vmem:[%s2462_s16 + $0xb8] sm:$0xff]  ;;  %v422_v63 = vmax.f32 %v2525_v26, %v2528_v27  ;;  %v449_v1 = vmax.f32 %v2535_v30, %v2538_v31  ;;  %p2187_p6 = pnand %p2186_p4, %p2405_p12  ;;  %s2191_s23 = scalar_lea.vmem %s2190_s21, 8192 }
  0x63   : > { %v378_v35 = vadd.f32 %v2544_v33, %v2541_v32  ;;  %v2557_v38 = vld [vmem:[%s2462_s16 + $0xd0] sm:$0xff]  ;;  %v2560_v39 = vld [vmem:[%s2462_s16 + $0xd8] sm:$0xff]  ;;  %v381_v40 = vadd.f32 %v2554_v37, %v2551_v36  ;;  %v344_v44 = vld [vmem:[%s2462_s16 + $0xe0] sm:$0xff]  ;;  %v443_v2 = vmax.f32 %v2541_v32, %v2544_v33  ;;  %v446_v4 = vmax.f32 %v2551_v36, %v2554_v37  ;;  %p2192_p10 = scmp.lt.s32.totalorder %s2990_s30, %s2190_s21  ;;  %p2193_p13 = scmp.lt.s32.totalorder %s2191_s23, %s2185_s13 }
  0x64   : > { %v387_v41 = vadd.f32 %v2560_v39, %v2557_v38  ;;  %v346_v42 = vld [vmem:[%s2462_s16 + $0xf0] sm:$0xff]  ;;  %v347_v43 = vld [vmem:[%s2462_s16 + $0xf8] sm:$0xff]  ;;  %v345_v45 = vld [vmem:[%s2462_s16 + $0xe8] sm:$0xff]  ;;  %v452_v5 = vmax.f32 %v2557_v38, %v2560_v39  ;;  %v2610_v18 = vshrl.u32 %v488_v14, 7  ;;  %p2188_p8 = pneg %p2187_p6 }
  0x65   : > { %367 = vadd.xlane.f32.xlu1 %v366_v16  ;;  %v393_v46 = vadd.f32 %v347_v43, %v346_v42  ;;  %v390_v47 = vadd.f32 %v345_v45, %v344_v44  ;;  %v461_v55 = vld [vmem:[%s3049_s1] sm:$0xff]  ;;  %v462_v56 = vld [vmem:[%s3049_s1 + $0x8] sm:$0xff]  ;;  %v463_v61 = vld [vmem:[%s3049_s1 + $0x10] sm:$0xff]  ;;  %v458_v6 = vmax.f32 %v346_v42, %v347_v43  ;;  %v455_v7 = vmax.f32 %v344_v44, %v345_v45  ;;  %p2194_p3 = por %p2193_p13, %p2192_p10 }
  0x66   : > { %355 = vadd.xlane.f32.xlu0 %v354_v17  ;;  %v1872_v58 = vpack.c.bf16 %v462_v56, %v461_v55  ;;  %v464_v62 = vld [vmem:[%s3049_s1 + $0x18] sm:$0xff]  ;;  %v489_v17 = vand.u32 127, %v488_v14 }
  0x67   : > { %v1875_v0 = vpack.c.bf16 %v464_v62, %v463_v61  ;;  %p2195_p7 = pnand %p2194_p3, %p2188_p8 }
  0x68   : > { %1873 = vmatpush3.bf16.msra.mxu0 %v1872_v58  ;;  %1879 = vmatpush3.bf16.msra.mxu1 %v1872_v58  ;;  %v494_v19 = vadd.s32 4294967288, %v489_v17  ;;  %v501_v21 = vadd.s32 4294967280, %v489_v17  ;;  %v2613_v24 = vsub.s32 %v489_v17, %v2610_v18 }
  0x69   : > { %376 = vadd.xlane.f32.xlu1 %v375_v22  ;;  %1874 = vmatprep.subr.bf16.mxu0 %v2261_v59 }
  0x6a   : > { %373 = vadd.xlane.f32.xlu0 %v372_v23  ;;  %1880 = vmatprep.subr.bf16.mxu1 %v2261_v59  ;;  %v508_v23 = vadd.s32 4294967272, %v489_v17  ;;  %v2616_v26 = vsub.s32 %v494_v19, %v2610_v18  ;;  %v2619_v30 = vsub.s32 %v501_v21, %v2610_v18 }
  0x6c   : > { %1876 = vmatpush3.bf16.msra.mxu0 %v1875_v0  ;;  %1882 = vmatpush3.bf16.msra.mxu1 %v1875_v0  ;;  %v2622_v36 = vsub.s32 %v508_v23, %v2610_v18 }
  0x6d   : > { %370 = vadd.xlane.f32.xlu1 %v369_v28  ;;  %1850 = vmatprep.subr.mxu0 %v2263_v3 }
  0x6e   : > { %358 = vadd.xlane.f32.xlu0 %v357_v29  ;;  %1866 = vmatprep.subr.mxu1 %v2263_v3 }
  0x71   : > { %385 = vadd.xlane.f32.xlu1 %v384_v34 }
  0x72   : > { %379 = vadd.xlane.f32.xlu0 %v378_v35 }
  0x75   : > { %382 = vadd.xlane.f32.xlu1 %v381_v40 }
  0x76   : > { %388 = vadd.xlane.f32.xlu0 %v387_v41 }
  0x79   : > { %394 = vadd.xlane.f32.xlu1 %v393_v46 }
  0x7a   : > { %391 = vadd.xlane.f32.xlu0 %v390_v47 }
  0x7d   : > { %417 = vmax.xlane.f32.xlu1 %v416_v48 }
  0x7e   : > { %414 = vmax.xlane.f32.xlu0 %v413_v49 }
  0x81   : > { %429 = vmax.xlane.f32.xlu1 %v428_v50 }
  0x82   : > { %426 = vmax.xlane.f32.xlu0 %v425_v51 }
  0x85   : > { %432 = vmax.xlane.f32.xlu1 %v431_v52 }
  0x86   : > { %420 = vmax.xlane.f32.xlu0 %v419_v53 }
  0x89   : > { %441 = vmax.xlane.f32.xlu1 %v440_v54 }
  0x8a   : > { %438 = vmax.xlane.f32.xlu0 %v437_v57 }
  0x8d   : > { %435 = vmax.xlane.f32.xlu1 %v434_v60 }
  0x8e   : > { %423 = vmax.xlane.f32.xlu0 %v422_v63 }
  0x91   : > { %450 = vmax.xlane.f32.xlu1 %v449_v1 }
  0x92   : > { %444 = vmax.xlane.f32.xlu0 %v443_v2 }
  0x95   : > { %447 = vmax.xlane.f32.xlu1 %v446_v4 }
  0x96   : > { %453 = vmax.xlane.f32.xlu0 %v452_v5 }
  0x99   : > { %459 = vmax.xlane.f32.xlu1 %v458_v6 }
  0x9a   : > { %456 = vmax.xlane.f32.xlu0 %v455_v7 }
  0xea   : > { %v362_v8 = vpop.xlane.xlu1 %361 }
  0xeb   : > { %v350_v9 = vpop.xlane.xlu0 %349  ;;  %v401_v25 = vmul.f32 0.00390625, %v362_v8 }
  0xec   : > { %v397_v38 = vmul.f32 0.00390625, %v350_v9 }
  0xed   : > { %v518_v41 = vrot.slane %v401_v25, %v2613_v24 }
  0xee   : > { %v365_v10 = vpop.xlane.xlu1 %364  ;;  %v493_v53 = vrot.slane %v397_v38, %v2613_v24 }
  0xef   : > { %v353_v11 = vpop.xlane.xlu0 %352  ;;  %v402_v27 = vmul.f32 0.00390625, %v365_v10 }
  0xf0   : > { %v398_v29 = vmul.f32 0.00390625, %v353_v11 }
  0xf1   : > { %v522_v42 = vrot.slane %v402_v27, %v2616_v26 }
  0xf2   : > { %v368_v12 = vpop.xlane.xlu1 %367  ;;  %v498_v44 = vrot.slane %v398_v29, %v2616_v26 }
  0xf3   : > { %v356_v13 = vpop.xlane.xlu0 %355  ;;  %v403_v31 = vmul.f32 0.00390625, %v368_v12  ;;  %v523_v57 = vsel %vm499_vm1, %v522_v42, %v518_v41 }
  0xf4   : > { %v399_v32 = vmul.f32 0.00390625, %v356_v13  ;;  %v500_v60 = vsel %vm499_vm1, %v498_v44, %v493_v53 }
  0xf5   : > { %v527_v45 = vrot.slane %v403_v31, %v2619_v30 }
  0xf6   : > { %v377_v15 = vpop.xlane.xlu1 %376  ;;  %v505_v46 = vrot.slane %v399_v32, %v2619_v30 }
  0xf7   : > { %v374_v16 = vpop.xlane.xlu0 %373  ;;  %v406_v34 = vmul.f32 0.00390625, %v377_v15  ;;  %v528_v61 = vsel %vm506_vm2, %v527_v45, %v523_v57 }
  0xf8   : > { %v405_v35 = vmul.f32 0.00390625, %v374_v16  ;;  %v507_v1 = vsel %vm506_vm2, %v505_v46, %v500_v60 }
  0xf9   : > { %v541_v49 = vrot.slane %v406_v34, %v2616_v26 }
  0xfa   : > { %v371_v20 = vpop.xlane.xlu1 %370  ;;  %v537_v50 = vrot.slane %v405_v35, %v2613_v24 }
  0xfb   : > { %v359_v22 = vpop.xlane.xlu0 %358  ;;  %v404_v37 = vmul.f32 0.00390625, %v371_v20 }
  0xfc   : > { %v400_v39 = vmul.f32 0.00390625, %v359_v22  ;;  %v542_v2 = vsel %vm499_vm1, %v541_v49, %v537_v50 }
  0xfd   : > { %v532_v51 = vrot.slane %v404_v37, %v2622_v36 }
  0xfe   : > { %v386_v28 = vpop.xlane.xlu1 %385  ;;  %v512_v54 = vrot.slane %v400_v39, %v2622_v36 }
  0xff   : > { %v380_v33 = vpop.xlane.xlu0 %379  ;;  %v409_v55 = vmul.f32 0.00390625, %v386_v28  ;;  %v533_v4 = vsel %vm513_vm3, %v532_v51, %v528_v61 }
 0x100   : > { %v407_v40 = vmul.f32 0.00390625, %v380_v33  ;;  %v514_v6 = vsel %vm513_vm3, %v512_v54, %v507_v1 }
 0x101   : > { %v556_v7 = vrot.slane %v409_v55, %v2613_v24  ;;  %v573_v16 = vsel %vm572_vm4, %v533_v4, %v514_v6 }
 0x102   : > { %v383_v43 = vpop.xlane.xlu1 %382  ;;  %v546_v56 = vrot.slane %v407_v40, %v2619_v30 }
 0x103   : > { %v408_v47 = vmul.f32 0.00390625, %v383_v43  ;;  %v389_v48 = vpop.xlane.xlu0 %388 }
 0x104   : > { %v410_v52 = vmul.f32 0.00390625, %v389_v48  ;;  %v547_v8 = vsel %vm506_vm2, %v546_v56, %v542_v2 }
 0x105   : > { %v551_v58 = vrot.slane %v408_v47, %v2622_v36 }
 0x106   : > { %v395_v59 = vpop.xlane.xlu1 %394  ;;  %v560_v62 = vrot.slane %v410_v52, %v2616_v26 }
 0x107   : > { %v412_v63 = vmul.f32 0.00390625, %v395_v59  ;;  %v392_v0 = vpop.xlane.xlu0 %391  ;;  %v552_v10 = vsel %vm513_vm3, %v551_v58, %v547_v8 }
 0x108   : > { %v411_v5 = vmul.f32 0.00390625, %v392_v0  ;;  %v561_v13 = vsel %vm499_vm1, %v560_v62, %v556_v7  ;;  %v575_v19 = vsel %vm574_vm5, %v552_v10, %v573_v16  ;;  %v1345_v16 = vld [vmem:[#allocation6 + $0x210] sm:$0xff] }
 0x109   : > { %v570_v9 = vrot.slane %v412_v63, %v2622_v36 }
 0x10a   : > { %v565_v11 = vrot.slane %v411_v5, %v2619_v30  ;;  %v418_v12 = vpop.xlane.xlu1 %417 }
 0x10b   : > { %v415_v14 = vpop.xlane.xlu0 %414  ;;  %v761_v37 = vrot.slane %v418_v12, %v2616_v26  ;;  %v1344_v12 = vld [vmem:[#allocation6 + $0x208] sm:$0xff] }
 0x10c   : > { %v566_v15 = vsel %vm506_vm2, %v565_v11, %v561_v13  ;;  %v757_v38 = vrot.slane %v415_v14, %v2613_v24  ;;  %v1346_v13 = vld [vmem:[#allocation6 + $0x218] sm:$0xff]  ;;  %v1343_v14 = vld [vmem:[#allocation6 + $0x200] sm:$0xff] }
 0x10d   : > { %v571_v17 = vsel %vm513_vm3, %v570_v9, %v566_v15  ;;  %v1947_v15 = vpack.c.bf16 %v1346_v13, %v1344_v12  ;;  %v1361_v12 = vld [vmem:[#allocation6 + $0x290] sm:$0xff] }
 0x10e   : > { %v430_v20 = vpop.xlane.xlu1 %429  ;;  %v577_v21 = vsel %vm576_vm6, %v571_v17, %v575_v19  ;;  %v762_v50 = vsel %vm499_vm1, %v761_v37, %v757_v38  ;;  %v1280_v17 = vld [vmem:[#allocation6 + $0x8] sm:$0xff]  ;;  %v1282_v19 = vld [vmem:[#allocation6 + $0x18] sm:$0xff]  ;;  %v1283_v37 = vld [vmem:[#allocation6 + $0x20] sm:$0xff] }
 0x10f   : > { %1848 = vmatmul.mubr.msk.f32.vlgmr.msra.gmra.mrb[0].mxu0 %vm578_vm7, %v577_v21  ;;  %v427_v22 = vpop.xlane.xlu0 %426  ;;  %v780_v34 = vrot.slane %v430_v20, %v2616_v26  ;;  %v1949_v20 = vpack.c.bf16 %v1345_v16, %v1343_v14  ;;  %v1883_v21 = vpack.c.bf16 %v1282_v19, %v1280_v17  ;;  %v1296_v14 = vld [vmem:[#allocation6 + $0x88] sm:$0xff]  ;;  %v1295_v17 = vld [vmem:[#allocation6 + $0x80] sm:$0xff]  ;;  %v1297_v19 = vld [vmem:[#allocation6 + $0x90] sm:$0xff] }
 0x110   : > { %1852 = vmatprep.mubr.msk.f32.mxu0 %vm2262_vm0, %v2263_v3  ;;  %v776_v35 = vrot.slane %v427_v22, %v2613_v24  ;;  %v1279_v22 = vld [vmem:[#allocation6] sm:$0xff] }
 0x112   : > { %v433_v23 = vpop.xlane.xlu1 %432  ;;  %v781_v48 = vsel %vm499_vm1, %v780_v34, %v776_v35  ;;  %v1284_v34 = vld [vmem:[#allocation6 + $0x28] sm:$0xff]  ;;  %v1286_v35 = vld [vmem:[#allocation6 + $0x38] sm:$0xff] }
 0x113   : > { %v421_v25 = vpop.xlane.xlu0 %420  ;;  %v785_v39 = vrot.slane %v433_v23, %v2619_v30  ;;  %v1281_v23 = vld [vmem:[#allocation6 + $0x10] sm:$0xff]  ;;  %v1887_v38 = vpack.c.bf16 %v1286_v35, %v1284_v34  ;;  %v1299_v34 = vld [vmem:[#allocation6 + $0xa0] sm:$0xff] }
 0x114   : > { %v766_v40 = vrot.slane %v421_v25, %v2619_v30  ;;  %v1348_v25 = vld [vmem:[#allocation6 + $0x228] sm:$0xff]  ;;  %v1301_v35 = vld [vmem:[#allocation6 + $0xb0] sm:$0xff] }
 0x115   : > { %v786_v51 = vsel %vm506_vm2, %v785_v39, %v781_v48  ;;  %v1285_v39 = vld [vmem:[#allocation6 + $0x30] sm:$0xff]  ;;  %v1287_v48 = vld [vmem:[#allocation6 + $0x40] sm:$0xff] }
 0x116   : > { %v442_v27 = vpop.xlane.xlu1 %441  ;;  %v767_v53 = vsel %vm506_vm2, %v766_v40, %v762_v50  ;;  %v1352_v40 = vld [vmem:[#allocation6 + $0x248] sm:$0xff] }
 0x117   : > { %v439_v28 = vpop.xlane.xlu0 %438  ;;  %v799_v41 = vrot.slane %v442_v27, %v2616_v26  ;;  %v1885_v27 = vpack.c.bf16 %v1281_v23, %v1279_v22  ;;  %v1366_v22 = vld [vmem:[#allocation6 + $0x2b8] sm:$0xff] }
 0x118   : > { %v795_v42 = vrot.slane %v439_v28, %v2613_v24  ;;  %v1350_v28 = vld [vmem:[#allocation6 + $0x238] sm:$0xff] }
 0x11a   : > { %v436_v29 = vpop.xlane.xlu1 %435  ;;  %v800_v54 = vsel %vm499_vm1, %v799_v41, %v795_v42  ;;  %v1354_v41 = vld [vmem:[#allocation6 + $0x258] sm:$0xff]  ;;  %v1889_v42 = vpack.c.bf16 %v1285_v39, %v1283_v37  ;;  %v1905_v37 = vpack.c.bf16 %v1301_v35, %v1299_v34  ;;  %v1383_v34 = vld [vmem:[#allocation6 + $0x340] sm:$0xff]  ;;  %v1385_v35 = vld [vmem:[#allocation6 + $0x350] sm:$0xff] }
 0x11b   : > { %v424_v31 = vpop.xlane.xlu0 %423  ;;  %v790_v43 = vrot.slane %v436_v29, %v2622_v36  ;;  %v1347_v29 = vld [vmem:[#allocation6 + $0x220] sm:$0xff]  ;;  %v1370_v39 = vld [vmem:[#allocation6 + $0x2d8] sm:$0xff] }
 0x11c   : > { %v771_v45 = vrot.slane %v424_v31, %v2622_v36  ;;  %v1349_v31 = vld [vmem:[#allocation6 + $0x230] sm:$0xff] }
 0x11d   : > { %v791_v55 = vsel %vm513_vm3, %v790_v43, %v786_v51  ;;  %v1955_v43 = vpack.c.bf16 %v1354_v41, %v1352_v40  ;;  %v1367_v41 = vld [vmem:[#allocation6 + $0x2c0] sm:$0xff] }
 0x11e   : > { %v451_v32 = vpop.xlane.xlu1 %450  ;;  %v772_v57 = vsel %vm513_vm3, %v771_v45, %v767_v53  ;;  %v1353_v45 = vld [vmem:[#allocation6 + $0x250] sm:$0xff]  ;;  %v1358_v53 = vld [vmem:[#allocation6 + $0x278] sm:$0xff] }
 0x11f   : > { %v445_v33 = vpop.xlane.xlu0 %444  ;;  %v814_v58 = vrot.slane %v451_v32, %v2613_v24  ;;  %v830_v0 = vsel %vm572_vm4, %v791_v55, %v772_v57  ;;  %v1951_v32 = vpack.c.bf16 %v1350_v28, %v1348_v25  ;;  %v1357_v57 = vld [vmem:[#allocation6 + $0x270] sm:$0xff]  ;;  %v1363_v25 = vld [vmem:[#allocation6 + $0x2a0] sm:$0xff] }
 0x120   : > { %v804_v46 = vrot.slane %v445_v33, %v2619_v30  ;;  %v1953_v33 = vpack.c.bf16 %v1349_v31, %v1347_v29  ;;  %v1300_v29 = vld [vmem:[#allocation6 + $0xa8] sm:$0xff]  ;;  %v1302_v31 = vld [vmem:[#allocation6 + $0xb8] sm:$0xff] }
 0x122   : > { %v448_v44 = vpop.xlane.xlu1 %447  ;;  %v805_v59 = vsel %vm506_vm2, %v804_v46, %v800_v54  ;;  %v1288_v46 = vld [vmem:[#allocation6 + $0x48] sm:$0xff] }
 0x123   : > { %v454_v47 = vpop.xlane.xlu0 %453  ;;  %v809_v49 = vrot.slane %v448_v44, %v2622_v36  ;;  %v1351_v44 = vld [vmem:[#allocation6 + $0x240] sm:$0xff] }
 0x124   : > { %v818_v52 = vrot.slane %v454_v47, %v2616_v26  ;;  %v1290_v47 = vld [vmem:[#allocation6 + $0x58] sm:$0xff]  ;;  %v1957_v50 = vpack.c.bf16 %v1353_v45, %v1351_v44  ;;  %v1304_v45 = vld [vmem:[#allocation6 + $0xc8] sm:$0xff] }
 0x125   : > { %v810_v62 = vsel %vm513_vm3, %v809_v49, %v805_v59  ;;  %v1289_v49 = vld [vmem:[#allocation6 + $0x50] sm:$0xff]  ;;  %v1891_v51 = vpack.c.bf16 %v1290_v47, %v1288_v46  ;;  %v1306_v46 = vld [vmem:[#allocation6 + $0xd8] sm:$0xff] }
 0x126   : > { %v460_v56 = vpop.xlane.xlu1 %459  ;;  %v819_v63 = vsel %vm499_vm1, %v818_v52, %v814_v58  ;;  %v831_v4 = vsel %vm574_vm5, %v810_v62, %v830_v0  ;;  %v1356_v52 = vld [vmem:[#allocation6 + $0x268] sm:$0xff]  ;;  %v1893_v54 = vpack.c.bf16 %v1289_v49, %v1287_v48  ;;  %v2708_v48 = vsub.s32 1, %v2610_v18 }
 0x127   : > { %v457_v60 = vpop.xlane.xlu0 %456  ;;  %v828_v61 = vrot.slane %v460_v56, %v2622_v36  ;;  %v1804_v36 = vld [vmem:[%s3050_s2] ss:$0 sm:$0xff]  ;;  %v1959_v55 = vpack.c.bf16 %v1358_v53, %v1356_v52  ;;  %v1026_v49 = vsub.s32 2, %v2610_v18  ;;  %v1907_v52 = vpack.c.bf16 %v1306_v46, %v1304_v45  ;;  %v1390_v45 = vld [vmem:[#allocation6 + $0x378] sm:$0xff] }
 0x128   : > { %v823_v26 = vrot.slane %v457_v60, %v2619_v30  ;;  %v652_v30 = vld [vmem:[%s3051_s3] sm:$0x3] }
 0x129   : > { %1851 = vmatpush3.msk.msra.mxu0 %vm664_vm8, %v652_v30  ;;  %v1355_v56 = vld [vmem:[#allocation6 + $0x260] sm:$0xff] }
 0x12a   : > { %v824_v1 = vsel %vm506_vm2, %v823_v26, %v819_v63  ;;  %1948 = vmatprep.subr.bf16.mxu0 %v1947_v15  ;;  %v1961_v58 = vpack.c.bf16 %v1357_v57, %v1355_v56  ;;  %v1298_v15 = vld [vmem:[#allocation6 + $0x98] sm:$0xff]  ;;  %v1371_v57 = vld [vmem:[#allocation6 + $0x2e0] sm:$0xff] }
 0x12b   : > { %v829_v2 = vsel %vm513_vm3, %v828_v61, %v824_v1  ;;  %v1806_v61 = vld [vmem:[%s3052_s4] ss:$0 sm:$0xff]  ;;  %v1899_v16 = vpack.c.bf16 %v1298_v15, %v1296_v14  ;;  %v1382_v14 = vld [vmem:[#allocation6 + $0x338] sm:$0xff] }
 0x12c   : > { %v832_v24 = vsel %vm576_vm6, %v829_v2, %v831_v4  ;;  %v2011_v62 = vadd.f32 %v1806_v61, %v1806_v61  ;;  %v1310_v61 = vld [vmem:[#allocation6 + $0xf8] sm:$0xff] }
 0x12d   : > { %1864 = vmatmul.mubr.msk.f32.vlgmr.msra.gmra.mrb[0].mxu1 %vm578_vm7, %v832_v24  ;;  %v1292_v24 = vld [vmem:[#allocation6 + $0x68] sm:$0xff] }
 0x12e   : > { %1868 = vmatprep.mubr.msk.f32.mxu1 %vm2262_vm0, %v2263_v3  ;;  %1867 = vmatpush3.msk.msra.mxu1 %vm664_vm8, %v652_v30  ;;  %v1294_v30 = vld [vmem:[#allocation6 + $0x78] sm:$0xff] }
 0x12f   : > { %1884 = vmatprep.subr.bf16.mxu1 %v1883_v21  ;;  %v1364_v21 = vld [vmem:[#allocation6 + $0x2a8] sm:$0xff] }
 0x130   : > { %v1967_v23 = vpack.c.bf16 %v1366_v22, %v1364_v21  ;;  %v1316_v21 = vld [vmem:[#allocation6 + $0x128] sm:$0xff]  ;;  %v1318_v22 = vld [vmem:[#allocation6 + $0x138] sm:$0xff] }
 0x1e2   : > { %v647_v5 = vpop.f32.mrb[0].mxu0 }
 0x1e3   : > { %v648_v6 = vadd.f32 %v1804_v36, %v647_v5  ;;  %v1849_v7 = vpop.f32.mrb[1].mxu0  ;;  %v1895_v5 = vpack.c.bf16 %v1294_v30, %v1292_v24  ;;  %v1378_v24 = vld [vmem:[#allocation6 + $0x318] sm:$0xff] }
 0x1e4   : > { %v1293_v7 = vld [vmem:[#allocation6 + $0x70] sm:$0xff] }
 0x1e5   : > { %v651_v8 = vmax.f32 %v648_v6, 0.0  ;;  %v1291_v6 = vld [vmem:[#allocation6 + $0x60] sm:$0xff] }
 0x1e7   : > { %1853 = vmatmul.mubr.msk.f32.vlgmr.msra.gmra.mrb[2].mxu0 %vm660_vm9, %v651_v8  ;;  %v1897_v8 = vpack.c.bf16 %v1293_v7, %v1291_v6  ;;  %v1312_v7 = vld [vmem:[#allocation6 + $0x108] sm:$0xff] }
 0x1e8   : > { %1950 = vmatpush1.bf16.msra.mxu0 %v1949_v20  ;;  %v1901_v20 = vpack.c.bf16 %v1297_v19, %v1295_v17  ;;  %v1381_v17 = vld [vmem:[#allocation6 + $0x330] sm:$0xff] }
 0x1e9   : > { %1952 = vmatprep.subr.bf16.mxu0 %v1951_v32  ;;  %v2702_v32 = vsub.s32 0, %v2610_v18 }
 0x1ec   : > { %1954 = vmatpush1.bf16.msra.mxu0 %v1953_v33  ;;  %v1903_v33 = vpack.c.bf16 %v1302_v31, %v1300_v29  ;;  %v1384_v29 = vld [vmem:[#allocation6 + $0x348] sm:$0xff]  ;;  %v1386_v31 = vld [vmem:[#allocation6 + $0x358] sm:$0xff] }
 0x1ed   : > { %1956 = vmatprep.subr.bf16.mxu0 %v1955_v43 }
 0x1f0   : > { %1958 = vmatpush1.bf16.msra.mxu0 %v1957_v50  ;;  %v1303_v50 = vld [vmem:[#allocation6 + $0xc0] sm:$0xff] }
 0x1f1   : > { %1960 = vmatprep.subr.bf16.mxu0 %v1959_v55  ;;  %v1374_v55 = vld [vmem:[#allocation6 + $0x2f8] sm:$0xff] }
 0x1f4   : > { %1962 = vmatpush1.bf16.msra.mxu0 %v1961_v58  ;;  %v1373_v58 = vld [vmem:[#allocation6 + $0x2f0] sm:$0xff] }
 0x200   : > { %v901_v9 = vpop.f32.mrb[0].mxu1 }
 0x201   : > { %v902_v10 = vadd.f32 %v1804_v36, %v901_v9  ;;  %v1865_v3 = vpop.f32.mrb[1].mxu1  ;;  %v1360_v9 = vld [vmem:[#allocation6 + $0x288] sm:$0xff] }
 0x203   : > { %v905_v11 = vmax.f32 %v902_v10, 0.0  ;;  %v1362_v10 = vld [vmem:[#allocation6 + $0x298] sm:$0xff] }
 0x204   : > { %v1963_v3 = vpack.c.bf16 %v1362_v10, %v1360_v9  ;;  %v1045_v9 = vsub.s32 3, %v2610_v18 }
 0x205   : > { %1869 = vmatmul.mubr.msk.f32.vlgmr.msra.gmra.mrb[2].mxu1 %vm660_vm9, %v905_v11  ;;  %v1359_v11 = vld [vmem:[#allocation6 + $0x280] sm:$0xff] }
 0x206   : > { %1886 = vmatpush1.bf16.msra.mxu1 %v1885_v27  ;;  %v1965_v13 = vpack.c.bf16 %v1361_v12, %v1359_v11  ;;  %1964 = vmatprep.subr.bf16.mxu0 %v1963_v3  ;;  %v1365_v27 = vld [vmem:[#allocation6 + $0x2b0] sm:$0xff]  ;;  %v1311_v3 = vld [vmem:[#allocation6 + $0x100] sm:$0xff] }
 0x207   : > { %1888 = vmatprep.subr.bf16.mxu1 %v1887_v38  ;;  %v1969_v28 = vpack.c.bf16 %v1365_v27, %v1363_v25  ;;  %v1368_v38 = vld [vmem:[#allocation6 + $0x2c8] sm:$0xff]  ;;  %v1313_v11 = vld [vmem:[#allocation6 + $0x110] sm:$0xff]  ;;  %v1315_v25 = vld [vmem:[#allocation6 + $0x120] sm:$0xff] }
 0x208   : > { %1966 = vmatpush1.bf16.msra.mxu0 %v1965_v13  ;;  %v1971_v40 = vpack.c.bf16 %v1370_v39, %v1368_v38  ;;  %v1917_v12 = vpack.c.bf16 %v1313_v11, %v1311_v3  ;;  %v1380_v13 = vld [vmem:[#allocation6 + $0x328] sm:$0xff]  ;;  %v1317_v27 = vld [vmem:[#allocation6 + $0x130] sm:$0xff]  ;;  %v1322_v39 = vld [vmem:[#allocation6 + $0x158] sm:$0xff] }
 0x209   : > { %1968 = vmatprep.subr.bf16.mxu0 %v1967_v23  ;;  %v1983_v15 = vpack.c.bf16 %v1382_v14, %v1380_v13  ;;  %v1919_v23 = vpack.c.bf16 %v1318_v22, %v1316_v21  ;;  %v1320_v38 = vld [vmem:[#allocation6 + $0x148] sm:$0xff]  ;;  %v1331_v3 = vld [vmem:[#allocation6 + $0x1a0] sm:$0xff]  ;;  %v1333_v11 = vld [vmem:[#allocation6 + $0x1b0] sm:$0xff] }
 0x20a   : > { %1890 = vmatpush1.bf16.msra.mxu1 %v1889_v42  ;;  %v1369_v42 = vld [vmem:[#allocation6 + $0x2d0] sm:$0xff]  ;;  %v1400_v13 = vld [vmem:[#allocation6 + $0x3c8] sm:$0xff]  ;;  %v1402_v14 = vld [vmem:[#allocation6 + $0x3d8] sm:$0xff] }
 0x20b   : > { %1892 = vmatprep.subr.bf16.mxu1 %v1891_v51  ;;  %v1973_v44 = vpack.c.bf16 %v1369_v42, %v1367_v41  ;;  %v1305_v51 = vld [vmem:[#allocation6 + $0xd0] sm:$0xff]  ;;  %v1319_v41 = vld [vmem:[#allocation6 + $0x140] sm:$0xff]  ;;  %v1338_v21 = vld [vmem:[#allocation6 + $0x1d8] sm:$0xff] }
 0x20c   : > { %1970 = vmatpush1.bf16.msra.mxu0 %v1969_v28  ;;  %v1909_v53 = vpack.c.bf16 %v1305_v51, %v1303_v50  ;;  %v1921_v28 = vpack.c.bf16 %v1317_v27, %v1315_v25  ;;  %v1321_v42 = vld [vmem:[#allocation6 + $0x150] sm:$0xff]  ;;  %v1335_v22 = vld [vmem:[#allocation6 + $0x1c0] sm:$0xff]  ;;  %v1404_v27 = vld [vmem:[#allocation6 + $0x3e8] sm:$0xff] }
 0x20d   : > { %1972 = vmatprep.subr.bf16.mxu0 %v1971_v40  ;;  %v1923_v40 = vpack.c.bf16 %v1322_v39, %v1320_v38  ;;  %v1389_v50 = vld [vmem:[#allocation6 + $0x370] sm:$0xff]  ;;  %v1342_v38 = vld [vmem:[#allocation6 + $0x1f8] sm:$0xff]  ;;  %v1339_v39 = vld [vmem:[#allocation6 + $0x1e0] sm:$0xff] }
 0x20e   : > { %1894 = vmatpush1.bf16.msra.mxu1 %v1893_v54  ;;  %v1372_v54 = vld [vmem:[#allocation6 + $0x2e8] sm:$0xff]  ;;  %v1337_v25 = vld [vmem:[#allocation6 + $0x1d0] sm:$0xff] }
 0x20f   : > { %1896 = vmatprep.subr.bf16.mxu1 %v1895_v5  ;;  %v1975_v56 = vpack.c.bf16 %v1374_v55, %v1372_v54  ;;  %v1377_v5 = vld [vmem:[#allocation6 + $0x310] sm:$0xff]  ;;  %v1323_v54 = vld [vmem:[#allocation6 + $0x160] sm:$0xff] }
 0x210   : > { %1974 = vmatpush1.bf16.msra.mxu0 %v1973_v44  ;;  %v1388_v44 = vld [vmem:[#allocation6 + $0x368] sm:$0xff]  ;;  %v1325_v55 = vld [vmem:[#allocation6 + $0x170] sm:$0xff] }
 0x211   : > { %1976 = vmatprep.subr.bf16.mxu0 %v1975_v56  ;;  %v1991_v46 = vpack.c.bf16 %v1390_v45, %v1388_v44  ;;  %v1929_v56 = vpack.c.bf16 %v1325_v55, %v1323_v54  ;;  %v2097_v54 = vld [vmem:[%s2462_s16] sm:$0xff] }
 0x212   : > { %1898 = vmatpush1.bf16.msra.mxu1 %v1897_v8  ;;  %v1314_v8 = vld [vmem:[#allocation6 + $0x118] sm:$0xff] }
 0x213   : > { %1900 = vmatprep.subr.bf16.mxu1 %v1899_v16  ;;  %v1915_v10 = vpack.c.bf16 %v1314_v8, %v1312_v7  ;;  %v1379_v16 = vld [vmem:[#allocation6 + $0x320] sm:$0xff]  ;;  %v1332_v8 = vld [vmem:[#allocation6 + $0x1a8] sm:$0xff] }
 0x214   : > { %v1985_v19 = vpack.c.bf16 %v1381_v17, %v1379_v16  ;;  %v1399_v16 = vld [vmem:[#allocation6 + $0x3c0] sm:$0xff]  ;;  %v1401_v17 = vld [vmem:[#allocation6 + $0x3d0] sm:$0xff] }
 0x216   : > { %1902 = vmatpush1.bf16.msra.mxu1 %v1901_v20 }
 0x217   : > { %1904 = vmatprep.subr.bf16.mxu1 %v1903_v33  ;;  %v1987_v33 = vpack.c.bf16 %v1386_v31, %v1384_v29  ;;  %v1941_v29 = vpack.c.bf16 %v1337_v25, %v1335_v22  ;;  %v2109_v25 = vld [vmem:[%s2462_s16 + $0x60] sm:$0xff] }
 0x21a   : > { %1906 = vmatpush1.bf16.msra.mxu1 %v1905_v37  ;;  %v1989_v37 = vpack.c.bf16 %v1385_v35, %v1383_v34  ;;  %v1405_v34 = vld [vmem:[#allocation6 + $0x3f0] sm:$0xff]  ;;  %v1340_v35 = vld [vmem:[#allocation6 + $0x1e8] sm:$0xff] }
 0x21b   : > { %1908 = vmatprep.subr.bf16.mxu1 %v1907_v52  ;;  %v1324_v52 = vld [vmem:[#allocation6 + $0x168] sm:$0xff] }
 0x21e   : > { %1910 = vmatpush1.bf16.msra.mxu1 %v1909_v53  ;;  %v1326_v53 = vld [vmem:[#allocation6 + $0x178] sm:$0xff] }
 0x2ba   : > { %v734_v59 = vpop.f32.mrb[2].mxu0 }
 0x2bb   : > { %v1854_v60 = vpop.f32.mrb[3].mxu0  ;;  %v2012_v26 = vadd.f32 %v2011_v62, %v734_v59  ;;  %v1977_v59 = vpack.c.bf16 %v1373_v58, %v1371_v57  ;;  %v1392_v57 = vld [vmem:[#allocation6 + $0x388] sm:$0xff]  ;;  %v1394_v58 = vld [vmem:[#allocation6 + $0x398] sm:$0xff] }
 0x2bc   : > { %v1308_v60 = vld [vmem:[#allocation6 + $0xe8] sm:$0xff] }
 0x2bd   : > { %1978 = vmatpush1.bf16.msra.mxu0 %v1977_v59  ;;  %v1995_v59 = vpack.c.bf16 %v1394_v58, %v1392_v57  ;;  %v2099_v58 = vld [vmem:[%s2462_s16 + $0x50] sm:$0xff] }
 0x2d8   : > { %v975_v63 = vpop.f32.mrb[2].mxu1 }
 0x2d9   : > { %v2013_v0 = vadd.f32 %v2012_v26, %v975_v63  ;;  %v1870_v1 = vpop.f32.mrb[3].mxu1  ;;  %v1911_v63 = vpack.c.bf16 %v1310_v61, %v1308_v60  ;;  %v1391_v60 = vld [vmem:[#allocation6 + $0x380] sm:$0xff]  ;;  %v1393_v61 = vld [vmem:[#allocation6 + $0x390] sm:$0xff] }
 0x2da   : > { %v1309_v1 = vld [vmem:[#allocation6 + $0xf0] sm:$0xff] }
 0x2db   : > { %v1812_v2 = vmul.f32 -1.442695, %v2013_v0  ;;  %v1307_v0 = vld [vmem:[#allocation6 + $0xe0] sm:$0xff]  ;;  %1912 = vmatprep.subr.bf16.mxu1 %v1911_v63  ;;  %v1330_v63 = vld [vmem:[#allocation6 + $0x198] sm:$0xff] }
 0x2dd   : > { %2083 = vpow2.f32 %v1812_v2  ;;  %v1913_v2 = vpack.c.bf16 %v1309_v1, %v1307_v0  ;;  %v1327_v1 = vld [vmem:[#allocation6 + $0x180] sm:$0xff] }
 0x2df   : > { %1914 = vmatpush1.bf16.msra.mxu1 %v1913_v2  ;;  %v1329_v2 = vld [vmem:[#allocation6 + $0x190] sm:$0xff] }
 0x2e0   : > { %1916 = vmatprep.subr.bf16.mxu1 %v1915_v10 }
 0x2e3   : > { %1918 = vmatpush1.bf16.msra.mxu1 %v1917_v12  ;;  %v1937_v12 = vpack.c.bf16 %v1333_v11, %v1331_v3  ;;  %v2106_v3 = vld [vmem:[%s2462_s16 + $0x88] sm:$0xff] }
 0x2e4   : > { %1920 = vmatprep.subr.bf16.mxu1 %v1919_v23 }
 0x2e7   : > { %v2084_v4 = vpop.eup %2083  ;;  %1922 = vmatpush1.bf16.msra.mxu1 %v1921_v28  ;;  %v1406_v28 = vld [vmem:[#allocation6 + $0x3f8] sm:$0xff] }
 0x2e8   : > { %v983_v36 = vadd.f32 1.0, %v2084_v4  ;;  %v1376_v4 = vld [vmem:[#allocation6 + $0x308] sm:$0xff]  ;;  %1924 = vmatprep.subr.bf16.mxu1 %v1923_v40  ;;  %v2007_v31 = vpack.c.bf16 %v1406_v28, %v1404_v27  ;;  %v1341_v40 = vld [vmem:[#allocation6 + $0x1f0] sm:$0xff] }
 0x2e9   : > { %v1979_v30 = vpack.c.bf16 %v1378_v24, %v1376_v4  ;;  %v1933_v4 = vpack.c.bf16 %v1329_v2, %v1327_v1  ;;  %v1396_v24 = vld [vmem:[#allocation6 + $0x3a8] sm:$0xff]  ;;  %v2101_v1 = vld [vmem:[%s2462_s16 + $0x20] sm:$0xff] }
 0x2ea   : > { %2085 = vrcp.f32 %v983_v36  ;;  %v1375_v36 = vld [vmem:[#allocation6 + $0x300] sm:$0xff]  ;;  %v2110_v28 = vld [vmem:[%s2462_s16 + $0x68] sm:$0xff] }
 0x2eb   : > { %v1981_v6 = vpack.c.bf16 %v1377_v5, %v1375_v36  ;;  %1980 = vmatprep.subr.bf16.mxu0 %v1979_v30  ;;  %v1398_v30 = vld [vmem:[#allocation6 + $0x3b8] sm:$0xff]  ;;  %v1395_v5 = vld [vmem:[#allocation6 + $0x3a0] sm:$0xff] }
 0x2ec   : > { %v1999_v36 = vpack.c.bf16 %v1398_v30, %v1396_v24  ;;  %v2102_v24 = vld [vmem:[%s2462_s16 + $0x40] sm:$0xff] }
 0x2ed   : > { %1982 = vmatpush1.bf16.msra.mxu0 %v1981_v6  ;;  %v1397_v6 = vld [vmem:[#allocation6 + $0x3b0] sm:$0xff] }
 0x2ee   : > { %1984 = vmatprep.subr.bf16.mxu0 %v1983_v15  ;;  %v2001_v7 = vpack.c.bf16 %v1397_v6, %v1395_v5  ;;  %v2003_v15 = vpack.c.bf16 %v1402_v14, %v1400_v13  ;;  %v2104_v6 = vld [vmem:[%s2462_s16 + $0x28] sm:$0xff] }
 0x2f1   : > { %1986 = vmatpush1.bf16.msra.mxu0 %v1985_v19  ;;  %v2005_v19 = vpack.c.bf16 %v1401_v17, %v1399_v16  ;;  %v2108_v17 = vld [vmem:[%s2462_s16 + $0x98] sm:$0xff] }
 0x2f2   : > { %1988 = vmatprep.subr.bf16.mxu0 %v1987_v33  ;;  %v1403_v33 = vld [vmem:[#allocation6 + $0x3e0] sm:$0xff] }
 0x2f4   : > { %v2086_v43 = vpop.eup %2085 }
 0x2f5   : > { %v2705_v47 = vrot.slane %v2086_v43, %v2702_v32  ;;  %v1008_v62 = vrot.slane %v2086_v43, %v2708_v48  ;;  %v1027_v26 = vrot.slane %v2086_v43, %v1026_v49  ;;  %v1046_v20 = vrot.slane %v2086_v43, %v1045_v9  ;;  %1990 = vmatpush1.bf16.msra.mxu0 %v1989_v37  ;;  %v1387_v49 = vld [vmem:[#allocation6 + $0x360] sm:$0xff]  ;;  %v1334_v9 = vld [vmem:[#allocation6 + $0x1b8] sm:$0xff] }
 0x2f6   : > { %v1925_v43 = vpack.c.bf16 %v1321_v42, %v1319_v41  ;;  %v1993_v51 = vpack.c.bf16 %v1389_v50, %v1387_v49  ;;  %1992 = vmatprep.subr.bf16.mxu0 %v1991_v46  ;;  %v1935_v10 = vpack.c.bf16 %v1334_v9, %v1332_v8  ;;  %v2009_v37 = vpack.c.bf16 %v1405_v34, %v1403_v33  ;;  %v2105_v9 = vld [vmem:[%s2462_s16 + $0x80] sm:$0xff] }
 0x2f7   : > { %995 = vbcast.lane.b32.xlu1 %v2705_v47, 264  ;;  %991 = vbcast.lane.b32.xlu0 %v2705_v47, 256  ;;  %v1943_v41 = vpack.c.bf16 %v1342_v38, %v1340_v35  ;;  %v1945_v42 = vpack.c.bf16 %v1341_v40, %v1339_v39  ;;  %v2111_v34 = vld [vmem:[%s2462_s16 + $0xa0] sm:$0xff] }
 0x2f8   : > { %1926 = vmatpush1.bf16.msra.mxu1 %v1925_v43 }
 0x2f9   : > { %1994 = vmatpush1.bf16.msra.mxu0 %v1993_v51  ;;  %v2095_v51 = vld [vmem:[%s2462_s16 + $0x10] sm:$0xff] }
 0x2fa   : > { %1996 = vmatprep.subr.bf16.mxu0 %v1995_v59 }
 0x2fb   : > { %1010 = vbcast.lane.b32.xlu1 %v1008_v62, 256  ;;  %1029 = vbcast.lane.b32.xlu0 %v1027_v26, 256 }
 0x2ff   : > { %1014 = vbcast.lane.b32.xlu1 %v1008_v62, 264  ;;  %999 = vbcast.lane.b32.xlu0 %v2705_v47, 272 }
 0x303   : > { %1033 = vbcast.lane.b32.xlu1 %v1027_v26, 264  ;;  %1048 = vbcast.lane.b32.xlu0 %v1046_v20, 256 }
 0x307   : > { %1018 = vbcast.lane.b32.xlu1 %v1008_v62, 272  ;;  %1037 = vbcast.lane.b32.xlu0 %v1027_v26, 272 }
 0x30b   : > { %1052 = vbcast.lane.b32.xlu1 %v1046_v20, 264  ;;  %1022 = vbcast.lane.b32.xlu0 %v1008_v62, 280  ;;  %v1997_v62 = vpack.c.bf16 %v1393_v61, %v1391_v60  ;;  %v2100_v60 = vld [vmem:[%s2462_s16 + $0x58] sm:$0xff] }
 0x30d   : > { %1998 = vmatpush1.bf16.msra.mxu0 %v1997_v62 }
 0x30e   : > { %2000 = vmatprep.subr.bf16.mxu0 %v1999_v36  ;;  %v2103_v36 = vld [vmem:[%s2462_s16 + $0x48] sm:$0xff] }
 0x30f   : > { %1003 = vbcast.lane.b32.xlu1 %v2705_v47, 280  ;;  %1041 = vbcast.lane.b32.xlu0 %v1027_v26, 280  ;;  %v1927_v47 = vpack.c.bf16 %v1326_v53, %v1324_v52  ;;  %v1328_v26 = vld [vmem:[#allocation6 + $0x188] sm:$0xff]  ;;  %v2096_v53 = vld [vmem:[%s2462_s16 + $0x18] sm:$0xff] }
 0x310   : > { %v1931_v0 = vpack.c.bf16 %v1330_v63, %v1328_v26 }
 0x311   : > { %1928 = vmatprep.subr.bf16.mxu1 %v1927_v47  ;;  %2002 = vmatpush1.bf16.msra.mxu0 %v2001_v7 }
 0x312   : > { %1930 = vmatpush1.bf16.msra.mxu1 %v1929_v56  ;;  %2004 = vmatprep.subr.bf16.mxu0 %v2003_v15  ;;  %v2098_v56 = vld [vmem:[%s2462_s16 + $0x8] sm:$0xff] }
 0x313   : > { %1056 = vbcast.lane.b32.xlu1 %v1046_v20, 272  ;;  %1932 = vmatprep.subr.bf16.mxu1 %v1931_v0 }
 0x315   : > { %2006 = vmatpush1.bf16.msra.mxu0 %v2005_v19 }
 0x316   : > { %1934 = vmatpush1.bf16.msra.mxu1 %v1933_v4  ;;  %2008 = vmatprep.subr.bf16.mxu0 %v2007_v31 }
 0x317   : > { %1060 = vbcast.lane.b32.xlu1 %v1046_v20, 280  ;;  %1936 = vmatprep.subr.bf16.mxu1 %v1935_v10  ;;  %v1336_v20 = vld [vmem:[#allocation6 + $0x1c8] sm:$0xff] }
 0x318   : > { %v1939_v23 = vpack.c.bf16 %v1338_v21, %v1336_v20 }
 0x319   : > { %2010 = vmatpush1.bf16.msra.mxu0 %v2009_v37  ;;  %v2112_v37 = vld [vmem:[%s2462_s16 + $0xa8] sm:$0xff] }
 0x31a   : > { %1938 = vmatpush1.bf16.msra.mxu1 %v1937_v12  ;;  %v2107_v12 = vld [vmem:[%s2462_s16 + $0x90] sm:$0xff] }
 0x31b   : > { %1940 = vmatprep.subr.bf16.mxu1 %v1939_v23 }
 0x31e   : > { %1942 = vmatpush1.bf16.msra.mxu1 %v1941_v29 }
 0x31f   : > { %1944 = vmatprep.subr.bf16.mxu1 %v1943_v41  ;;  %v2113_v41 = vld [vmem:[%s2462_s16 + $0xc0] sm:$0xff] }
 0x322   : > { %1946 = vmatpush1.bf16.msra.mxu1 %v1945_v42 }
 0x369   : > { %v996_v43 = vpop.permute.xlu1 %995  ;;  %v992_v44 = vpop.permute.xlu0 %991 }
 0x36a   : > { %v2718_v52 = vmul.f32 %v2095_v51, %v996_v43  ;;  %v2721_v47 = vmul.f32 %v2096_v53, %v996_v43  ;;  %v2724_v55 = vmul.f32 %v2097_v54, %v992_v44  ;;  %v2727_v57 = vmul.f32 %v2098_v56, %v992_v44  ;;  %v2114_v43 = vld [vmem:[%s2462_s16 + $0xc8] sm:$0xff]  ;;  %v2115_v56 = vld [vmem:[%s2462_s16 + $0xd0] sm:$0xff] }
 0x36c   : > { %v1094_v63 = vadd.f32 %v2718_v52, %v2724_v55  ;;  %v1103_v0 = vadd.f32 %v2721_v47, %v2727_v57  ;;  %v1175_v4 = vmax.f32 %v2724_v55, %v2718_v52  ;;  %v1184_v8 = vmax.f32 %v2727_v57, %v2721_v47 }
 0x36d   : > { %v1011_v45 = vpop.permute.xlu1 %1010  ;;  %v1030_v46 = vpop.permute.xlu0 %1029 }
 0x36e   : > { %v2745_v30 = vmul.f32 %v2102_v24, %v1011_v45  ;;  %v2748_v5 = vmul.f32 %v2103_v36, %v1011_v45  ;;  %v2756_v10 = vmul.f32 %v2105_v9, %v1030_v46  ;;  %v2759_v11 = vmul.f32 %v2106_v3, %v1030_v46 }
 0x371   : > { %v1015_v49 = vpop.permute.xlu1 %1014  ;;  %v1000_v50 = vpop.permute.xlu0 %999 }
 0x372   : > { %v2730_v59 = vmul.f32 %v2099_v58, %v1015_v49  ;;  %v2733_v61 = vmul.f32 %v2100_v60, %v1015_v49  ;;  %v2740_v2 = vmul.f32 %v2101_v1, %v1000_v50  ;;  %v2751_v7 = vmul.f32 %v2104_v6, %v1000_v50  ;;  %v2116_v60 = vld [vmem:[%s2462_s16 + $0x70] sm:$0xff] }
 0x374   : > { %v1112_v14 = vadd.f32 %v2730_v59, %v2745_v30  ;;  %v1121_v15 = vadd.f32 %v2733_v61, %v2748_v5  ;;  %v1193_v16 = vmax.f32 %v2745_v30, %v2730_v59  ;;  %v1202_v22 = vmax.f32 %v2748_v5, %v2733_v61 }
 0x375   : > { %v1034_v62 = vpop.permute.xlu1 %1033  ;;  %v1049_v26 = vpop.permute.xlu0 %1048  ;;  %v1095_v23 = vadd.f32 %v1094_v63, %v2740_v2  ;;  %v1104_v31 = vadd.f32 %v1103_v0, %v2751_v7  ;;  %v1176_v33 = vmax.f32 %v1175_v4, %v2740_v2  ;;  %v1185_v39 = vmax.f32 %v1184_v8, %v2751_v7  ;;  %v2118_v8 = vld [vmem:[%s2462_s16 + $0xd8] sm:$0xff] }
 0x376   : > { %v2762_v13 = vmul.f32 %v2107_v12, %v1034_v62  ;;  %v2771_v19 = vmul.f32 %v2108_v17, %v1034_v62  ;;  %v2794_v42 = vmul.f32 %v2113_v41, %v1049_v26  ;;  %v2797_v44 = vmul.f32 %v2114_v43, %v1049_v26  ;;  %v2117_v26 = vld [vmem:[%s2462_s16 + $0x78] sm:$0xff] }
 0x378   : > { %3081 = vst [vmem:[#allocation12_spill] sm:$0xff] %v2771_v19  ;;  %v1130_v40 = vadd.f32 %v2762_v13, %v2756_v10  ;;  %3084 = vst [vmem:[#allocation15_spill] sm:$0xff] %v2794_v42  ;;  %v1139_v45 = vadd.f32 %v2771_v19, %v2759_v11  ;;  %v1211_v46 = vmax.f32 %v2756_v10, %v2762_v13 }
 0x379   : > { %v1019_v20 = vpop.permute.xlu1 %1018  ;;  %v1038_v21 = vpop.permute.xlu0 %1037  ;;  %3085 = vst [vmem:[#allocation16_spill] sm:$0xff] %v2797_v44  ;;  %v1220_v49 = vmax.f32 %v2759_v11, %v2771_v19 }
 0x37a   : > { %v2777_v27 = vmul.f32 %v2109_v25, %v1019_v20  ;;  %v2780_v29 = vmul.f32 %v2110_v28, %v1019_v20  ;;  %v2785_v35 = vmul.f32 %v2111_v34, %v1038_v21  ;;  %v2788_v38 = vmul.f32 %v2112_v37, %v1038_v21  ;;  %v2119_v21 = vld [vmem:[%s2462_s16 + $0x30] sm:$0xff]  ;;  %v2120_v25 = vld [vmem:[%s2462_s16 + $0x38] sm:$0xff] }
 0x37b   : > { %v2121_v34 = vld [vmem:[%s2462_s16 + $0xb0] sm:$0xff] }
 0x37c   : > { %3082 = vst [vmem:[#allocation13_spill] sm:$0xff] %v2785_v35  ;;  %3083 = vst [vmem:[#allocation14_spill] sm:$0xff] %v2788_v38  ;;  %v1113_v50 = vadd.f32 %v1112_v14, %v2777_v27  ;;  %v1122_v54 = vadd.f32 %v1121_v15, %v2780_v29  ;;  %v1194_v0 = vmax.f32 %v1193_v16, %v2777_v27 }
 0x37d   : > { %v1053_v51 = vpop.permute.xlu1 %1052  ;;  %v1023_v53 = vpop.permute.xlu0 %1022  ;;  %v1203_v1 = vmax.f32 %v1202_v22, %v2780_v29  ;;  %v2819_v4 = vadd.f32 %v1130_v40, %v2785_v35  ;;  %v2822_v24 = vadd.f32 %v1139_v45, %v2788_v38  ;;  %v2825_v36 = vmax.f32 %v1211_v46, %v2785_v35  ;;  %v2122_v40 = vld [vmem:[%s2462_s16 + $0xb8] sm:$0xff] }
 0x37e   : > { %v2808_v58 = vmul.f32 %v2115_v56, %v1053_v51  ;;  %v2811_v62 = vmul.f32 %v2116_v60, %v1023_v53  ;;  %v2814_v63 = vmul.f32 %v2117_v26, %v1023_v53  ;;  %v2828_v6 = vmax.f32 %v1220_v49, %v2788_v38 }
 0x37f   : > { %v2831_v9 = vmul.f32 %v2118_v8, %v1053_v51 }
 0x380   : > { %3086 = vst [vmem:[#allocation17_spill] sm:$0xff] %v2808_v58  ;;  %v2835_v3 = vadd.f32 %v2808_v58, %v2794_v42  ;;  %v1114_v12 = vadd.f32 %v1113_v50, %v2811_v62  ;;  %v1123_v14 = vadd.f32 %v1122_v54, %v2814_v63  ;;  %v1195_v15 = vmax.f32 %v1194_v0, %v2811_v62 }
 0x381   : > { %3087 = vst [vmem:[#allocation18_spill] sm:$0xff] %v2831_v9  ;;  %v1204_v16 = vmax.f32 %v1203_v1, %v2814_v63  ;;  %v1004_v17 = vpop.permute.xlu1 %1003  ;;  %v1042_v20 = vpop.permute.xlu0 %1041 }
 0x382   : > { %v2842_v22 = vmul.f32 %v2119_v21, %v1004_v17  ;;  %v2845_v28 = vmul.f32 %v2120_v25, %v1004_v17  ;;  %v2848_v37 = vmul.f32 %v2121_v34, %v1042_v20  ;;  %v2851_v41 = vmul.f32 %v2122_v40, %v1042_v20 }
 0x383   : > { %v1115_v43 = vrot.slane %v1114_v12, 4  ;;  %v1124_v45 = vrot.slane %v1123_v14, 4  ;;  %v1196_v46 = vrot.slane %v1195_v15, 4  ;;  %v1205_v49 = vrot.slane %v1204_v16, 4 }
 0x384   : > { %3088 = vst [vmem:[#allocation19_spill] sm:$0xff] %v2848_v37  ;;  %3089 = vst [vmem:[#allocation20_spill] sm:$0xff] %v2851_v41  ;;  %v1096_v50 = vadd.f32 %v1095_v23, %v2842_v22  ;;  %v1105_v51 = vadd.f32 %v1104_v31, %v2845_v28  ;;  %v1177_v53 = vmax.f32 %v1176_v33, %v2842_v22 }
 0x385   : > { %v1186_v54 = vmax.f32 %v1185_v39, %v2845_v28  ;;  %v1116_v56 = vadd.f32 %v1115_v43, %v1114_v12  ;;  %v1125_v60 = vadd.f32 %v1124_v45, %v1123_v14  ;;  %v1197_v26 = vmax.f32 %v1195_v15, %v1196_v46 }
 0x386   : > { %v1206_v0 = vmax.f32 %v1204_v16, %v1205_v49  ;;  %v1097_v1 = vrot.slane %v1096_v50, 4  ;;  %v1106_v8 = vrot.slane %v1105_v51, 4  ;;  %v1178_v17 = vrot.slane %v1177_v53, 4 }
 0x387   : > { %v1187_v20 = vrot.slane %v1186_v54, 4  ;;  %v1117_v21 = vrot.slane %v1116_v56, 2  ;;  %v1126_v25 = vrot.slane %v1125_v60, 2  ;;  %v1198_v34 = vrot.slane %v1197_v26, 2 }
 0x388   : > { %v1207_v40 = vrot.slane %v1206_v0, 2  ;;  %v1098_v38 = vadd.f32 %v1097_v1, %v1096_v50  ;;  %v1107_v23 = vadd.f32 %v1106_v8, %v1105_v51  ;;  %v1179_v35 = vmax.f32 %v1177_v53, %v1178_v17  ;;  %v1057_v51 = vpop.permute.xlu1 %1056 }
 0x389   : > { %v1188_v31 = vmax.f32 %v1186_v54, %v1187_v20  ;;  %v1118_v19 = vadd.f32 %v1117_v21, %v1116_v56  ;;  %v2857_v33 = vadd.f32 %v1126_v25, %v1125_v60  ;;  %v1199_v39 = vmax.f32 %v1197_v26, %v1198_v34 }
 0x38a   : > { %v2859_v12 = vmax.f32 %v1206_v0, %v1207_v40  ;;  %v1099_v14 = vrot.slane %v1098_v38, 2  ;;  %v1108_v15 = vrot.slane %v1107_v23, 2  ;;  %v1180_v16 = vrot.slane %v1179_v35, 2 }
 0x38b   : > { %v1189_v43 = vrot.slane %v1188_v31, 2  ;;  %v1157_v45 = vadd.f32 %v2831_v9, %v2797_v44  ;;  %v1229_v46 = vmax.f32 %v2794_v42, %v2808_v58  ;;  %v1119_v49 = vrot.slane %v1118_v19, 1 }
 0x38c   : > { %v1200_v50 = vrot.slane %v1199_v39, 1  ;;  %v1238_v53 = vmax.f32 %v2797_v44, %v2831_v9  ;;  %v1100_v54 = vadd.f32 %v1099_v14, %v1098_v38  ;;  %v1109_v56 = vadd.f32 %v1108_v15, %v1107_v23 }
 0x38d   : > { %v1181_v60 = vmax.f32 %v1179_v35, %v1180_v16  ;;  %v1209_v0 = vrot.slane %v2859_v12, 1  ;;  %v1132_v1 = vadd.f32 %v2819_v4, %v2848_v37  ;;  %v1141_v8 = vadd.f32 %v2822_v24, %v2851_v41  ;;  %v2123_v4 = vld [vmem:[%s2462_s16 + $0xe0] sm:$0xff]  ;;  %v2124_v24 = vld [vmem:[%s2462_s16 + $0xe8] sm:$0xff] }
 0x38e   : > { %v2873_v17 = vadd.f32 %v1119_v49, %v1118_v19  ;;  %v2875_v20 = vmax.f32 %v1199_v39, %v1200_v50  ;;  %v1101_v21 = vrot.slane %v1100_v54, 1  ;;  %v1190_v38 = vmax.f32 %v1188_v31, %v1189_v43  ;;  %v1061_v49 = vpop.permute.xlu1 %1060 }
 0x38f   : > { %v1133_v25 = vrot.slane %v1132_v1, 4  ;;  %v1142_v34 = vrot.slane %v1141_v8, 4  ;;  %v1213_v35 = vmax.f32 %v2825_v36, %v2848_v37  ;;  %v1222_v40 = vmax.f32 %v2828_v6, %v2851_v41 }
 0x390   : > { %v1110_v23 = vrot.slane %v1109_v56, 1  ;;  %v1182_v14 = vrot.slane %v1181_v60, 1  ;;  %v2882_v15 = vmul.f32 %v2123_v4, %v1057_v51  ;;  %v2885_v19 = vmul.f32 %v2124_v24, %v1057_v51 }
 0x391   : > { %v1134_v39 = vadd.f32 %v1133_v25, %v1132_v1  ;;  %v1143_v16 = vadd.f32 %v1142_v34, %v1141_v8  ;;  %v1214_v31 = vrot.slane %v1213_v35, 4  ;;  %v1223_v43 = vrot.slane %v1222_v40, 4  ;;  %v2125_v8 = vld [vmem:[%s2462_s16 + $0xf0] sm:$0xff]  ;;  %v2126_v34 = vld [vmem:[%s2462_s16 + $0xf8] sm:$0xff]  ;;  %s1407_s16 = sld [smem:[#allocation2]] }
 0x392   : > { %3090 = vst [vmem:[#allocation21_spill] sm:$0xff] %v2882_v15  ;;  %3091 = vst [vmem:[#allocation22_spill] sm:$0xff] %v2885_v19  ;;  %v1102_v50 = vadd.f32 %v1101_v21, %v1100_v54  ;;  %v1191_v36 = vrot.slane %v1190_v38, 1  ;;  %v1149_v6 = vadd.f32 %v2835_v3, %v2882_v15  ;;  %v1158_v26 = vadd.f32 %v1157_v45, %v2885_v19 }
 0x393   : > { %v1135_v9 = vrot.slane %v1134_v39, 2  ;;  %v1144_v4 = vrot.slane %v1143_v16, 2  ;;  %v1215_v58 = vmax.f32 %v1213_v35, %v1214_v31  ;;  %v1224_v44 = vmax.f32 %v1222_v40, %v1223_v43 }
 0x394   : > { %v1230_v51 = vmax.f32 %v1229_v46, %v2882_v15  ;;  %v1239_v1 = vmax.f32 %v1238_v53, %v2885_v19  ;;  %v2893_v25 = vmul.f32 %v2125_v8, %v1061_v49  ;;  %v2896_v24 = vmul.f32 %v2126_v34, %v1061_v49 }
 0x395   : > { %v1183_v54 = vmax.f32 %v1181_v60, %v1182_v14  ;;  %v1136_v21 = vadd.f32 %v1135_v9, %v1134_v39  ;;  %v1216_v42 = vrot.slane %v1215_v58, 2  ;;  %v1225_v3 = vrot.slane %v1224_v44, 2 }
 0x396   : > { %v1150_v45 = vadd.f32 %v1149_v6, %v2893_v25  ;;  %v1159_v41 = vadd.f32 %v1158_v26, %v2896_v24  ;;  %v1231_v35 = vmax.f32 %v1230_v51, %v2893_v25  ;;  %v1240_v46 = vmax.f32 %v1239_v1, %v2896_v24 }
 0x397   : > { %v1145_v40 = vadd.f32 %v1144_v4, %v1143_v16  ;;  %v1217_v53 = vmax.f32 %v1215_v58, %v1216_v42  ;;  %v1226_v31 = vmax.f32 %v1224_v44, %v1225_v3  ;;  %v1192_v43 = vmax.f32 %v1190_v38, %v1191_v36 }
 0x398   : > { %v1151_v8 = vrot.slane %v1150_v45, 4  ;;  %v1160_v19 = vrot.slane %v1159_v41, 4  ;;  %v1232_v49 = vrot.slane %v1231_v35, 4  ;;  %v1241_v34 = vrot.slane %v1240_v46, 4 }
 0x399   : > { %v1137_v60 = vrot.slane %v1136_v21, 1  ;;  %v1210_v9 = vmax.f32 %v2859_v12, %v1209_v0  ;;  %v1227_v14 = vrot.slane %v1226_v31, 1  ;;  %v1111_v39 = vadd.f32 %v1110_v23, %v1109_v56 }
 0x39a   : > { %v1152_v6 = vadd.f32 %v1151_v8, %v1150_v45  ;;  %v1161_v15 = vadd.f32 %v1160_v19, %v1159_v41  ;;  %v1233_v26 = vmax.f32 %v1231_v35, %v1232_v49  ;;  %v1242_v37 = vmax.f32 %v1240_v46, %v1241_v34 }
 0x39b   : > { %v1218_v51 = vrot.slane %v1217_v53, 1  ;;  %v1274_v1 = vsel %vm572_vm4, %v1210_v9, %v1192_v43  ;;  %v3092_v42 = vrot.slane %v2857_v33, 1  ;;  %v1146_v58 = vrot.slane %v1145_v40, 1 }
 0x39c   : > { %v1153_v38 = vrot.slane %v1152_v6, 2  ;;  %v1162_v16 = vrot.slane %v1161_v15, 2  ;;  %v1234_v36 = vrot.slane %v1233_v26, 2  ;;  %v1243_v4 = vrot.slane %v1242_v37, 2 }
 0x39d   : > { %v1129_v44 = vadd.f32 %v3092_v42, %v2857_v33  ;;  %v1228_v3 = vmax.f32 %v1226_v31, %v1227_v14  ;;  %v1271_v12 = vsel %vm572_vm4, %v2875_v20, %v1183_v54  ;;  %v1147_v56 = vadd.f32 %v1146_v58, %v1145_v40 }
 0x39e   : > { %v1168_v41 = vmul.f32 0.03125, %v1111_v39  ;;  %v1154_v0 = vadd.f32 %v1153_v38, %v1152_v6  ;;  %v1235_v23 = vmax.f32 %v1233_v26, %v1234_v36  ;;  %v1244_v19 = vmax.f32 %v1242_v37, %v1243_v4 }
 0x39f   : > { %v1163_v45 = vadd.f32 %v1162_v16, %v1161_v15  ;;  %v1219_v35 = vmax.f32 %v1217_v53, %v1218_v51  ;;  %v1170_v46 = vmul.f32 0.03125, %v1129_v44  ;;  %v1138_v43 = vadd.f32 %v1137_v60, %v1136_v21 }
 0x3a0   : > { %v1167_v8 = vmul.f32 0.03125, %v1102_v50  ;;  %v1245_v33 = vrot.slane %v1244_v19, 1  ;;  %v1236_v49 = vrot.slane %v1235_v23, 1  ;;  %v1155_v9 = vrot.slane %v1154_v0, 1 }
 0x3a1   : > { %v1164_v34 = vrot.slane %v1163_v45, 1  ;;  %v1172_v42 = vmul.f32 0.03125, %v1147_v56  ;;  %v1258_v31 = vsel %vm572_vm4, %v1170_v46, %v1168_v41  ;;  %v1169_v14 = vmul.f32 0.03125, %v2873_v17 }
 0x3a2   : > { %v1246_v20 = vmax.f32 %v1244_v19, %v1245_v33  ;;  %v1237_v54 = vmax.f32 %v1235_v23, %v1236_v49  ;;  %v1171_v39 = vmul.f32 0.03125, %v1138_v43  ;;  %v1275_v37 = vsel %vm574_vm5, %v1228_v3, %v1274_v1 }
 0x3a3   : > { %v1165_v40 = vadd.f32 %v1164_v34, %v1163_v45  ;;  %v1272_v15 = vsel %vm574_vm5, %v1219_v35, %v1271_v12  ;;  %v1156_v53 = vadd.f32 %v1155_v9, %v1154_v0  ;;  %v1255_v50 = vsel %vm572_vm4, %v1169_v14, %v1167_v8 }
 0x3a4   : > { %v1276_v21 = vsel %vm576_vm6, %v1246_v20, %v1275_v37  ;;  %v1273_v60 = vsel %vm576_vm6, %v1237_v54, %v1272_v15  ;;  %v1259_v26 = vsel %vm574_vm5, %v1172_v42, %v1258_v31  ;;  %v1256_v44 = vsel %vm574_vm5, %v1171_v39, %v1255_v50 }
 0x3a5   : > { %v1174_v6 = vmul.f32 0.03125, %v1165_v40  ;;  %1544 = vmatprep.mubr.f32.mxu0 %v1276_v21  ;;  %v1173_v17 = vmul.f32 0.03125, %v1156_v53  ;;  %v1408_v38 = vstv %s1407_s16  ;;  %v2264_v43 = vmov 1966171168  }
 0x3a6   : > { %1545 = vmatmul.mubr.f32.vlgmr.msra.gmra.mrb[4].mxu0 %v1273_v60  ;;  %v1567_v8 = vunpack.c.l.s4 %v2264_v43 }
 0x3a7   : > { %v1260_v51 = vsel %vm576_vm6, %v1174_v6, %v1259_v26  ;;  %v1257_v1 = vsel %vm576_vm6, %v1173_v17, %v1256_v44 }
 0x3a8   : > { %1473 = vmatprep.mubr.f32.mxu1 %v1260_v51  ;;  %v1568_v33 = vunpack.c.0.s8 %v1567_v8 }
 0x3a9   : > { %1474 = vmatmul.mubr.f32.vlgmr.msra.gmra.mrb[4].mxu1 %v1257_v1 }
 0x3aa   : > { %v1571_v34 = vsub.s32 %v1568_v33, %v2610_v18 }
 0x479   : > { %v1546_v58 = vpop.f32.mrb[4].mxu0 }
 0x47a   : > { %v1548_v16 = vpop.f32.mrb[5].mxu0 }
 0x47c   : > { %v1475_v36 = vpop.f32.mrb[4].mxu1 }
 0x47d   : > { %v1476_v4 = vadd.f32 %v1475_v36, %v1408_v38  ;;  %v1477_v3 = vpop.f32.mrb[5].mxu1  ;;  %v3097_v36 = vld [vmem:[#allocation20_spill] sm:$0xff] }
 0x47e   : > { %v1478_v12 = vadd.f32 %v1477_v3, %v1408_v38  ;;  %v3099_v3 = vld [vmem:[#allocation16_spill] sm:$0xff] }
 0x47f   : > { %v1547_v56 = vadd.f32 %v1546_v58, %v1476_v4  ;;  %v3098_v4 = vld [vmem:[#allocation15_spill] sm:$0xff] }
 0x480   : > { %v1549_v41 = vadd.f32 %v1548_v16, %v1478_v12 }
 0x481   : > { %v1813_v0 = vmul.f32 -1.442695, %v1547_v56  ;;  %v3100_v56 = vld [vmem:[#allocation17_spill] sm:$0xff] }
 0x482   : > { %v1814_v23 = vmul.f32 -1.442695, %v1549_v41 }
 0x483   : > { %2087 = vpow2.f32 %v1813_v0  ;;  %v3101_v0 = vld [vmem:[#allocation18_spill] sm:$0xff] }
 0x484   : > { %2089 = vpow2.f32 %v1814_v23 }
 0x48d   : > { %v2088_v19 = vpop.eup %2087 }
 0x48e   : > { %v2090_v45 = vpop.eup %2089  ;;  %v1557_v35 = vadd.f32 1.0, %v2088_v19  ;;  %v3102_v19 = vld [vmem:[#allocation21_spill] sm:$0xff] }
 0x48f   : > { %v1558_v46 = vadd.f32 1.0, %v2090_v45 }
 0x490   : > { %2091 = vrcp.f32 %v1557_v35  ;;  %v3103_v35 = vld [vmem:[#allocation22_spill] sm:$0xff] }
 0x491   : > { %2093 = vrcp.f32 %v1558_v46 }
 0x49a   : > { %v2092_v49 = vpop.eup %2091 }
 0x49b   : > { %v2094_v9 = vpop.eup %2093 }
 0x49c   : > { %v1565_v42 = vcombine.low %v2092_v49, %v2094_v9 }
 0x49e   : > { %v1572_v31 = vrot.slane %v1565_v42, %v1571_v34 }
 0x4a0   : > { %v1573_v14 = vcombine.high %v1572_v31, %v1572_v31  ;;  %v1580_v20 = vrot.slane %v1572_v31, %v1571_v34 }
 0x4a2   : > { %v1587_v54 = vrot.slane %v1573_v14, %v1571_v34  ;;  %v1588_v40 = vcombine.high %v1580_v20, %v1580_v20  ;;  %v1593_v39 = vrot.slane %v1580_v20, %v2702_v32  ;;  %v1597_v37 = vrot.slane %v1580_v20, %v2708_v48 }
 0x4a4   : > { %v1589_v15 = vcombine.high %v1587_v54, %v1587_v54  ;;  %v1601_v53 = vrot.slane %v1587_v54, %v2702_v32  ;;  %v1605_v50 = vrot.slane %v1587_v54, %v2708_v48  ;;  %v1609_v21 = vrot.slane %v1588_v40, %v2702_v32 }
 0x4a5   : > { %v1613_v18 = vrot.slane %v1588_v40, %v2708_v48  ;;  %v1630_v60 = vmul.f32 %v1593_v39, %v2724_v55  ;;  %v1631_v6 = vmul.f32 %v1597_v37, %v2727_v57  ;;  %v1632_v26 = vmul.f32 %v1593_v39, %v2718_v52 }
 0x4a6   : > { %v1617_v17 = vrot.slane %v1589_v15, %v2702_v32  ;;  %v1621_v51 = vrot.slane %v1589_v15, %v2708_v48  ;;  %v1633_v44 = vmul.f32 %v1597_v37, %v2721_v47  ;;  %v1634_v1 = vmul.f32 %v1593_v39, %v2740_v2 }
 0x4a7   : > { %v1635_v58 = vmul.f32 %v1597_v37, %v2751_v7  ;;  %v1636_v38 = vmul.f32 %v1593_v39, %v2842_v22  ;;  %v1637_v16 = vmul.f32 %v1597_v37, %v2845_v28  ;;  %v1638_v55 = vmul.f32 %v1601_v53, %v2745_v30  ;;  %1662 = vst [vmem:[%s2940_s25] sm:$0xff] %v1630_v60  ;;  %v3093_v7 = vld [vmem:[#allocation12_spill] sm:$0xff]  ;;  %v3096_v22 = vld [vmem:[#allocation19_spill] sm:$0xff] }
 0x4a8   : > { %1663 = vst [vmem:[%s2940_s25 + $0x8] sm:$0xff] %v1631_v6  ;;  %1664 = vst [vmem:[%s2940_s25 + $0x10] sm:$0xff] %v1632_v26  ;;  %v1639_v32 = vmul.f32 %v1605_v50, %v2748_v5  ;;  %v1640_v48 = vmul.f32 %v1601_v53, %v2730_v59  ;;  %v1641_v52 = vmul.f32 %v1605_v50, %v2733_v61 }
 0x4a9   : > { %v1642_v47 = vmul.f32 %v1601_v53, %v2777_v27  ;;  %1665 = vst [vmem:[%s2940_s25 + $0x18] sm:$0xff] %v1633_v44  ;;  %1666 = vst [vmem:[%s2940_s25 + $0x20] sm:$0xff] %v1634_v1  ;;  %v1643_v57 = vmul.f32 %v1605_v50, %v2780_v29  ;;  %v1644_v2 = vmul.f32 %v1601_v53, %v2811_v62  ;;  %v3094_v29 = vld [vmem:[#allocation13_spill] sm:$0xff] }
 0x4aa   : > { %v1645_v30 = vmul.f32 %v1605_v50, %v2814_v63  ;;  %v1646_v5 = vmul.f32 %v1609_v21, %v2756_v10  ;;  %1667 = vst [vmem:[%s2940_s25 + $0x28] sm:$0xff] %v1635_v58  ;;  %1668 = vst [vmem:[%s2940_s25 + $0x30] sm:$0xff] %v1636_v38  ;;  %v1647_v59 = vmul.f32 %v1613_v18, %v2759_v11  ;;  %v3095_v10 = vld [vmem:[#allocation14_spill] sm:$0xff] }
 0x4ab   : > { %1669 = vst [vmem:[%s2940_s25 + $0x38] sm:$0xff] %v1637_v16  ;;  %1670 = vst [vmem:[%s2940_s25 + $0x40] sm:$0xff] %v1638_v55  ;;  %v1648_v61 = vmul.f32 %v1609_v21, %v2762_v13  ;;  %v1649_v27 = vmul.f32 %v1613_v18, %v3093_v7  ;;  %v1650_v62 = vmul.f32 %v1609_v21, %v3094_v29 }
 0x4ac   : > { %1671 = vst [vmem:[%s2940_s25 + $0x48] sm:$0xff] %v1639_v32  ;;  %1672 = vst [vmem:[%s2940_s25 + $0x50] sm:$0xff] %v1640_v48  ;;  %v1651_v63 = vmul.f32 %v1613_v18, %v3095_v10  ;;  %v1652_v28 = vmul.f32 %v1609_v21, %v3096_v22  ;;  %v1653_v11 = vmul.f32 %v1613_v18, %v3097_v36 }
 0x4ad   : > { %1673 = vst [vmem:[%s2940_s25 + $0x58] sm:$0xff] %v1641_v52  ;;  %1674 = vst [vmem:[%s2940_s25 + $0x60] sm:$0xff] %v1642_v47  ;;  %v1654_v13 = vmul.f32 %v1617_v17, %v3098_v4  ;;  %v1655_v12 = vmul.f32 %v1621_v51, %v3099_v3  ;;  %v1656_v41 = vmul.f32 %v1617_v17, %v3100_v56 }
 0x4ae   : > { %1675 = vst [vmem:[%s2940_s25 + $0x68] sm:$0xff] %v1643_v57  ;;  %1676 = vst [vmem:[%s2940_s25 + $0x70] sm:$0xff] %v1644_v2  ;;  %v1657_v23 = vmul.f32 %v1621_v51, %v3101_v0  ;;  %v1658_v45 = vmul.f32 %v1617_v17, %v3102_v19  ;;  %v1659_v46 = vmul.f32 %v1621_v51, %v3103_v35 }
 0x4af   : > { %1677 = vst [vmem:[%s2940_s25 + $0x78] sm:$0xff] %v1645_v30  ;;  %1678 = vst [vmem:[%s2940_s25 + $0x80] sm:$0xff] %v1646_v5  ;;  %v1660_v43 = vmul.f32 %v1617_v17, %v2893_v25  ;;  %v1661_v8 = vmul.f32 %v1621_v51, %v2896_v24 }
 0x4b0   : > { %1679 = vst [vmem:[%s2940_s25 + $0x88] sm:$0xff] %v1647_v59  ;;  %1680 = vst [vmem:[%s2940_s25 + $0x90] sm:$0xff] %v1648_v61 }
 0x4b1   : > { %1681 = vst [vmem:[%s2940_s25 + $0x98] sm:$0xff] %v1649_v27  ;;  %1682 = vst [vmem:[%s2940_s25 + $0xa0] sm:$0xff] %v1650_v62 }
 0x4b2   : > { %1683 = vst [vmem:[%s2940_s25 + $0xa8] sm:$0xff] %v1651_v63  ;;  %1684 = vst [vmem:[%s2940_s25 + $0xb0] sm:$0xff] %v1652_v28 }
 0x4b3   : > { %1685 = vst [vmem:[%s2940_s25 + $0xb8] sm:$0xff] %v1653_v11  ;;  %1686 = vst [vmem:[%s2940_s25 + $0xc0] sm:$0xff] %v1654_v13 }
 0x4b4   : > { %1687 = vst [vmem:[%s2940_s25 + $0xc8] sm:$0xff] %v1655_v12  ;;  %1688 = vst [vmem:[%s2940_s25 + $0xd0] sm:$0xff] %v1656_v41 }
 0x4b5   : > { %1689 = vst [vmem:[%s2940_s25 + $0xd8] sm:$0xff] %v1657_v23  ;;  %1690 = vst [vmem:[%s2940_s25 + $0xe0] sm:$0xff] %v1658_v45 }
 0x4b6   : > { %1691 = vst [vmem:[%s2940_s25 + $0xe8] sm:$0xff] %v1659_v46  ;;  %1692 = vst [vmem:[%s2940_s25 + $0xf0] sm:$0xff] %v1660_v43 }
 0x4b7   : > { %1693 = vst [vmem:[%s2940_s25 + $0xf8] sm:$0xff] %v1661_v8 }
 0x4b8   : > { %2198 = shalt.err (!%p2195_p7)
}
 0x4b9   : > { %s2199_s12 = scalar_lea.hbm %s2988_s15, 4096  ;;  %s2203_s16 = scalar_lea.hbm %s3055_s7, 8192 }
 0x4ba   : > { %p2200_p9 = scmp.ne.s32.totalorder %s2988_s15, %s2199_s12  ;;  %p2204_p5 = scmp.lt.u32.totalorder %s2988_s15, %s3055_s7 }
 0x4bb   : > { %p2205_p11 = scmp.lt.u32.totalorder %s2203_s16, %s2199_s12  ;;  %p2207_p4 = scmp.lt.u32.totalorder %s2199_s12, %s2988_s15 }
 0x4bc   : > { %p2201_p1 = pnand %p2200_p9, %p2405_p12 }
 0x4bd   : > { %p2206_p2 = por %p2205_p11, %p2204_p5 }
 0x4be   : > { %p2202_p0 = pneg %p2201_p1 }
 0x4bf   : > { %p2208_p6 = por %p2207_p4, %p2206_p2 }
 0x4c1   : > { %p2209_p8 = pnand %p2208_p6, %p2202_p0 }
 0x4c3   : > { %2212 = shalt.err (!%p2209_p8)
}
 0x4c4   : > { %s2266_s6 = smov 256   ;;  %s2267_s24 = smov 16  }
 0x4c5   : > { %2024 = dma.vmem_to_hbm [thread:$0]  (%p2405_p12), %s2990_s30, 4096, %s2988_s15, %s1695_s11, %s2266_s6, %s2266_s6, %s2267_s24  }
 0x4c6 PF: > { %s1724_s13 = sand.u32 1, %s2243_s26   ;;  %p3104_p10 = scmp.ne.s32.totalorder %s3071_s9, 0 }
 0x4c7   : > { %p3105_p13 = scmp.ge.s32.totalorder %s2255_s29, 2  ;;  %s1725_s20 = scalar_lea.sflag [#allocation5], %s1724_s13 }
 0x4c9   : > { %p2035_p3 = pnand %p3105_p13, %p3104_p10 }
 0x4cb   : > { %2238 = dma.done.wait (!%p2035_p3), %s1725_s20, 4096  }
 0x4cc   : > { %2240 = vsyncadd (!%p2035_p3), %s1725_s20, 4294963200  ;;  %p22_p7 = scmp.ge.s32.totalorder %s2367_s14, 4   ;;  %s3106_s26 = smov %s2247_s27 }
 0x4cd   : > { %s3107_s27 = smov %s2251_s28  ;;  %s3108_s28 = smov %s2401_s18 }
 0x4ce   : > { %s3109_s29 = smov %s2367_s14  ;;  %24 = sbr.rel (!%p22_p7) target bundleno = 8 (0x8), region = 97 }
 0x4d5   :  { %1730 = vsyncpa [#allocation4], 1 }
 0x4d6   :  { %1732 = vsyncpa [#allocation4 + $0x1], 1 }
 0x4d7   :  { %1733 = vsyncpa [#allocation7], 1 }
 0x4d8   :  { %1734 = vsyncpa [#allocation5], 1 }
 0x4d9   :  { %1736 = vsyncpa [#allocation5 + $0x1], 1 }

</bundles_post_ra>
